<compile_context>
chip_gen: v7x
topology: tpu7x:2x2x1
jax: 0.10.0
libtpu: 0.0.40
codegen_flags: <defaults>
</compile_context>

<pallas_src>
import functools

import jax
import jax.numpy as jnp
from jax import lax
from jax.experimental import pallas as pl
from jax.experimental.pallas import tpu as pltpu


def _round_up(x, m):
    return ((x + m - 1) // m) * m


def _pick_tm(T, tm_target=512):
    """Pick a lane-dense (multiple of 128) time tile that does not over-pad T."""
    n_tiles = max(1, -(-T // tm_target))
    tm = -(-T // n_tiles)
    return _round_up(tm, 128)


# ----------------------------------------------------------------------------- #
# Kernel 1: fused main path (transposed, lane-dense)
#   (fs, TM) frames -> input_proj -> (+4*aux_emb arn stand-in) -> output_proj
# ----------------------------------------------------------------------------- #
def _main_path_kernel(frames_ref, aux_ref, wit_ref, bit_ref, wot_ref, bot_ref, o_ref):
    x = frames_ref[0]                                             # (fs, TM) bf16
    proj = jnp.dot(wit_ref[...], x, preferred_element_type=jnp.float32)   # (F, TM)
    proj = proj + bit_ref[...] + 4.0 * aux_ref[0]                 # bias + aux conditioning
    # TODO(synk): arn_block_separate_cat stand-in -- 4 blocks collapsed to +4*aux_emb.
    y = jnp.dot(wot_ref[...], proj.astype(jnp.bfloat16),
                preferred_element_type=jnp.float32) + bot_ref[...]        # (fs, TM)
    o_ref[0] = y.astype(o_ref.dtype)


def main_path(frames_t, aux_emb, p, tm_target=512):
    """frames_t (B, fs, T) bf16, aux_emb (B, F) f32 -> (B, fs, T) bf16."""
    B, fs, T = frames_t.shape
    F = aux_emb.shape[1]

    TM = _pick_tm(T, tm_target)
    T_pad = _round_up(T, TM)
    if T_pad != T:
        frames_t = jnp.pad(frames_t, ((0, 0), (0, 0), (0, T_pad - T)))

    wit = p["WiT"].astype(jnp.bfloat16)                           # (F, fs)
    wot = p["WoT"].astype(jnp.bfloat16)                           # (fs, F)
    aux_t = aux_emb.reshape(B, F, 1)                              # reshape (dim-1) == transpose

    grid = (B, T_pad // TM)
    flops = 4 * B * T_pad * fs * F
    bytes_accessed = (B * T_pad * fs * 2 * 2                      # bf16 in + bf16 out
                      + 2 * (fs * F) * 2 * 2 + B * F * 4)

    out = pl.pallas_call(
        _main_path_kernel,
        out_shape=jax.ShapeDtypeStruct((B, fs, T_pad), jnp.bfloat16),
        grid=grid,
        in_specs=[pl.BlockSpec((1, fs, TM), lambda b, t: (b, 0, t)),
                  pl.BlockSpec((1, F, 1), lambda b, t: (b, 0, 0)),
                  pl.BlockSpec((F, fs), lambda b, t: (0, 0)),
                  pl.BlockSpec((F, 1), lambda b, t: (0, 0)),
                  pl.BlockSpec((fs, F), lambda b, t: (0, 0)),
                  pl.BlockSpec((fs, 1), lambda b, t: (0, 0))],
        out_specs=pl.BlockSpec((1, fs, TM), lambda b, t: (b, 0, t)),
        compiler_params=pltpu.CompilerParams(
            dimension_semantics=("parallel", "parallel"),
            vmem_limit_bytes=32 * 1024 * 1024),
        cost_estimate=pl.CostEstimate(flops=flops, transcendentals=0,
                                      bytes_accessed=bytes_accessed),
    )(frames_t, aux_t, wit, p["biT"], wot, p["boT"])
    return out[:, :, :T]


# ----------------------------------------------------------------------------- #
# Kernel 2: fused aux + classifier path (per batch item)
#   input_proj -> masked GlobalLayerNorm -> ECAPA stand-in -> attentive stats pool
#   -> bn5 -> fc6 -> bn6 -> L2-normalize -> classify (padded to 128 lanes)
# ----------------------------------------------------------------------------- #
def _aux_cls_kernel(lens_ref, frames_ref,
                    wi_ref, bi_ref, gg_ref, gb_ref,
                    we_ref, be_ref,
                    w1h_ref, w1m_ref, w1s_ref, b1_ref, bns_ref, bnb_ref,
                    w2_ref, b2_ref,
                    s5_ref, b5_ref, w6_ref, b6_ref, s6_ref, b6b_ref,
                    wc_ref, bc_ref,
                    emb_o_ref, logits_o_ref, *, eps):
    b = pl.program_id(0)
    n = lens_ref[b]
    nf = jnp.maximum(n.astype(jnp.float32), 1.0)

    x = frames_ref[0]                                             # (Ta, fs) bf16
    Ta = x.shape[0]
    feat = wi_ref.shape[1]

    col_valid = lax.broadcasted_iota(jnp.int32, (Ta, 1), 0) < n   # (Ta, 1)
    maskf = col_valid.astype(jnp.float32)
    row_mask = (lax.broadcasted_iota(jnp.int32, (1, Ta), 1) < n).astype(jnp.bfloat16)

    # ---- input_proj (bf16 MXU, f32 acc) ----
    proj = jnp.dot(x, wi_ref[...], preferred_element_type=jnp.float32) + bi_ref[...]

    # ---- masked GlobalLayerNorm over the valid (n, F) slice (one-pass stats) ----
    pm = proj * maskf
    cnt = nf * feat
    mean = jnp.sum(pm) / cnt
    var = jnp.maximum(jnp.sum(pm * proj) / cnt - mean * mean, 0.0)
    y = (gg_ref[...] * (proj - mean) * lax.rsqrt(var + eps) + gb_ref[...]) * maskf

    # TODO(synk): ECAPA definition not provided; shape-preserving stand-in (1x1 conv + ReLU).
    h = jnp.maximum(
        jnp.dot(y.astype(jnp.bfloat16), we_ref[...], preferred_element_type=jnp.float32)
        + be_ref[...], 0.0)                                       # (Ta, H) f32
    hm = h * maskf
    hm16 = hm.astype(jnp.bfloat16)

    # ---- per-item mean / unbiased std over valid frames (MXU row-contractions) ----
    sum_h = jnp.dot(row_mask, hm16, preferred_element_type=jnp.float32)       # (1, H)
    mean_h = sum_h / nf
    s2h = jnp.dot(row_mask, (hm * h).astype(jnp.bfloat16),
                  preferred_element_type=jnp.float32)
    var_h = (s2h - nf * mean_h * mean_h) / jnp.maximum(nf - 1.0, 1.0)
    std_h = jnp.sqrt(jnp.maximum(var_h, 1e-4))

    # ---- attention layer: conv1x1 on cat(h, mean, std) without the (3H,T) concat ----
    att = (jnp.dot(hm16, w1h_ref[...], preferred_element_type=jnp.float32)
           + jnp.dot(mean_h.astype(jnp.bfloat16), w1m_ref[...],
                     preferred_element_type=jnp.float32)
           + jnp.dot(std_h.astype(jnp.bfloat16), w1s_ref[...],
                     preferred_element_type=jnp.float32)
           + b1_ref[...])
    att = jnp.maximum(att, 0.0)                                   # ReLU
    att = att * bns_ref[...] + bnb_ref[...]                       # BatchNorm (eval)
    att = jnp.tanh(att)
    s = (jnp.dot(att.astype(jnp.bfloat16), w2_ref[...], preferred_element_type=jnp.float32)
         + b2_ref[...])                                           # (Ta, H)

    # ---- masked softmax over time + attentive stats pooling ----
    s = jnp.where(col_valid, s, -1e30)
    e = jnp.exp(s - jnp.max(s, axis=0, keepdims=True)) * maskf    # (Ta, H)
    denom = jnp.dot(row_mask, e.astype(jnp.bfloat16), preferred_element_type=jnp.float32)
    inv_denom = pl.reciprocal(jnp.maximum(denom, 1e-30), approx=True)         # (1, H)
    mu = jnp.dot(row_mask, (hm * e).astype(jnp.bfloat16),
                 preferred_element_type=jnp.float32) * inv_denom               # (1, H)
    s2w = jnp.dot(row_mask, (hm * hm * e).astype(jnp.bfloat16),
                  preferred_element_type=jnp.float32) * inv_denom
    sg = jnp.sqrt(jnp.maximum(s2w - mu * mu, 1e-4))
    pooled = jnp.concatenate([mu, sg], axis=1)                    # (1, 2H)

    # ---- fused classifier epilogue: bn5 -> fc6 -> bn6 -> normalize -> classify ----
    e5 = pooled * s5_ref[...] + b5_ref[...]                       # bn5 (eval)
    f = (jnp.dot(e5.astype(jnp.bfloat16), w6_ref[...], preferred_element_type=jnp.float32)
         + b6_ref[...])
    f = f * s6_ref[...] + b6b_ref[...]                            # bn6 (eval), (1, F)
    emb_o_ref[0] = f
    fn = f * lax.rsqrt(jnp.maximum(jnp.sum(f * f), 1e-24))        # F.normalize
    logits_o_ref[0] = (jnp.dot(fn.astype(jnp.bfloat16), wc_ref[...],
                               preferred_element_type=jnp.float32) + bc_ref[...])


def aux_classifier_path(aux_frames, aux_len, p, eps=1e-5):
    """aux_frames (B, Ta, fs), aux_len (B,) -> (aux_emb (B,F), logits (B,NPAD))."""
    B, Ta, fs = aux_frames.shape
    F = p["Wi"].shape[1]
    H = p["We"].shape[1]
    NPAD = p["Wc_pad"].shape[1]

    bf = jnp.bfloat16
    frames16 = aux_frames.astype(bf)

    full2d = lambda b, l: (0, 0)
    grid_spec = pltpu.PrefetchScalarGridSpec(
        num_scalar_prefetch=1, grid=(B,),
        in_specs=[pl.BlockSpec((1, Ta, fs), lambda b, l: (b, 0, 0)),
                  pl.BlockSpec((fs, F), full2d), pl.BlockSpec((1, F), full2d),
                  pl.BlockSpec((1, F), full2d), pl.BlockSpec((1, F), full2d),
                  pl.BlockSpec((F, H), full2d), pl.BlockSpec((1, H), full2d),
                  pl.BlockSpec((H, H), full2d), pl.BlockSpec((H, H), full2d),
                  pl.BlockSpec((H, H), full2d), pl.BlockSpec((1, H), full2d),
                  pl.BlockSpec((1, H), full2d), pl.BlockSpec((1, H), full2d),
                  pl.BlockSpec((H, H), full2d), pl.BlockSpec((1, H), full2d),
                  pl.BlockSpec((1, 2 * H), full2d), pl.BlockSpec((1, 2 * H), full2d),
                  pl.BlockSpec((2 * H, F), full2d), pl.BlockSpec((1, F), full2d),
                  pl.BlockSpec((1, F), full2d), pl.BlockSpec((1, F), full2d),
                  pl.BlockSpec((F, NPAD), full2d), pl.BlockSpec((1, NPAD), full2d)],
        out_specs=(pl.BlockSpec((1, 1, F), lambda b, l: (b, 0, 0)),
                   pl.BlockSpec((1, 1, NPAD), lambda b, l: (b, 0, 0))))

    emb, logits = pl.pallas_call(
        functools.partial(_aux_cls_kernel, eps=eps),
        out_shape=(jax.ShapeDtypeStruct((B, 1, F), jnp.float32),
                   jax.ShapeDtypeStruct((B, 1, NPAD), jnp.float32)),
        grid_spec=grid_spec,
        compiler_params=pltpu.CompilerParams(
            dimension_semantics=("parallel",),
            vmem_limit_bytes=32 * 1024 * 1024),
    )(aux_len, frames16,
      p["Wi"].astype(bf), p["bi"], p["gln_gamma"], p["gln_beta"],
      p["We"].astype(bf), p["be"],
      p["W1h"].astype(bf), p["W1m"].astype(bf), p["W1s"].astype(bf), p["b1"],
      p["bns"], p["bnb"], p["W2t"].astype(bf), p["b2"],
      p["s5"], p["b5"], p["W6"].astype(bf), p["b6"], p["s6"], p["b6b"],
      p["Wc_pad"].astype(bf), p["bc_pad"])
    return emb[:, 0, :], logits[:, 0, :]                          # (B, F), (B, NPAD)


# ----------------------------------------------------------------------------- #
# Framing / overlap-add: pure reshape/slice/concat arithmetic (no gather/scatter)
# ----------------------------------------------------------------------------- #
def get_frames(sig, frame_size, frame_shift, out_dtype=jnp.float32):
    B, N = sig.shape
    assert frame_size % frame_shift == 0, "frame_size must be a multiple of frame_shift"
    k = frame_size // frame_shift
    T = N // frame_shift
    pad_right = (T - 1) * frame_shift + frame_size - N
    padded = jnp.pad(sig, ((0, 0), (0, pad_right)))
    L = N + pad_right                                             # = (T + k - 1) * frame_shift
    chunks = padded.reshape(B, L // frame_shift, frame_shift)
    frames = jnp.concatenate([chunks[:, j:j + T, :] for j in range(k)], axis=-1)
    return frames.astype(out_dtype)                               # (B, T, frame_size)


def ola(frames, size, frame_size, frame_shift):
    frames = frames.astype(jnp.float32)
    B, T, _ = frames.shape
    k = frame_size // frame_shift
    L_chunks = T + k - 1
    parts = frames.reshape(B, T, k, frame_shift)
    num = jnp.zeros((B, L_chunks, frame_shift), jnp.float32)
    den = jnp.zeros((1, L_chunks, frame_shift), jnp.float32)
    ones = jnp.ones((1, T, frame_shift), jnp.float32)
    for j in range(k):
        num = num + jnp.pad(parts[:, :, j, :], ((0, 0), (j, k - 1 - j), (0, 0)))
        den = den + jnp.pad(ones, ((0, 0), (j, k - 1 - j), (0, 0)))
    sig = (num / den).reshape(B, L_chunks * frame_shift)
    return sig[:, :size]


# ----------------------------------------------------------------------------- #
# Parameters (eval-mode BN folded: running mean=0, var=1)
# ----------------------------------------------------------------------------- #
def init_params(frame_size, feature_dim, hidden_dim, n_cls=101, n_cls_pad=128):
    ks = jax.random.split(jax.random.PRNGKey(42), 8)

    def w(key, shape, scale=0.05):
        return scale * jax.random.normal(key, shape, jnp.float32)

    bn_scale = jnp.float32(1.0 / jnp.sqrt(1.0 + 1e-5))
    H, F = hidden_dim, feature_dim
    Wi = w(ks[0], (frame_size, F)); bi = jnp.zeros((1, F), jnp.float32)
    Wo = w(ks[6], (F, frame_size)); bo = jnp.zeros((1, frame_size), jnp.float32)
    w1 = w(ks[2], (3 * H, H))                                     # conv1 weight (transposed)
    wc = w(ks[5], (F, n_cls))
    wc_pad = jnp.concatenate([wc, jnp.zeros((F, n_cls_pad - n_cls), jnp.float32)], axis=1)
    return dict(
        Wi=Wi, bi=bi, WiT=Wi.T, biT=bi.T,                         # (F, fs), (F, 1)
        WoT=Wo.T, boT=bo.T,                                       # (fs, F), (fs, 1)
        gln_gamma=jnp.ones((1, F), jnp.float32), gln_beta=jnp.zeros((1, F), jnp.float32),
        We=w(ks[1], (F, H)), be=jnp.zeros((1, H), jnp.float32),
        W1h=w1[:H], W1m=w1[H:2 * H], W1s=w1[2 * H:], b1=jnp.zeros((1, H), jnp.float32),
        bns=jnp.full((1, H), bn_scale, jnp.float32), bnb=jnp.zeros((1, H), jnp.float32),
        W2t=w(ks[3], (H, H)), b2=jnp.zeros((1, H), jnp.float32),
        s5=jnp.full((1, 2 * H), bn_scale, jnp.float32), b5=jnp.zeros((1, 2 * H), jnp.float32),
        W6=w(ks[4], (2 * H, F)), b6=jnp.zeros((1, F), jnp.float32),
        s6=jnp.full((1, F), bn_scale, jnp.float32), b6b=jnp.zeros((1, F), jnp.float32),
        Wc_pad=wc_pad, bc_pad=jnp.zeros((1, n_cls_pad), jnp.float32),
    )


# ----------------------------------------------------------------------------- #
# NET_Wrapper forward
# ----------------------------------------------------------------------------- #
def net_wrapper_forward(p, inp, anchor, input_len, aux_len, *,
                        frame_size, frame_shift, feature_dim, hidden_dim, n_cls=101):
    B, len_sig = inp.shape

    # framing (reshape arithmetic); main-path frames transposed to (B, fs, T) bf16
    frames = get_frames(inp, frame_size, frame_shift)                      # (B, T, fs)
    frames_t = jnp.transpose(frames, (0, 2, 1)).astype(jnp.bfloat16)       # (B, fs, T)
    aux_frames = get_frames(anchor, frame_size, frame_shift)               # (B, Ta, fs)

    # aux/anchor + classifier path: one fused kernel per batch item
    aux_emb, logits_pad = aux_classifier_path(aux_frames, aux_len, p)      # (B,F), (B,128)
    classify_out = logits_pad[:, :n_cls]

    # main path: fused input_proj -> (+4*aux_emb arn stand-in) -> output_proj
    out_frames_t = main_path(frames_t, aux_emb, p)                         # (B, fs, T) bf16
    out_frames = jnp.transpose(out_frames_t, (0, 2, 1))                    # (B, T, fs)

    signal = ola(out_frames, len_sig, frame_size, frame_shift)             # (B, len_sig)
    return signal, classify_out


# ----------------------------------------------------------------------------- #
if __name__ == "__main__":
    B, FRAME_SIZE, FRAME_SHIFT = 2, 32, 16
    FEATURE_DIM, HIDDEN_DIM, LEN_SIG, N_CLS = 64, 32, 256, 101

    key = jax.random.PRNGKey(0)
    k1, k2 = jax.random.split(key)
    x = jax.random.normal(k1, (B, LEN_SIG), jnp.float32)
    anchor = jax.random.normal(k2, (B, LEN_SIG), jnp.float32)
    input_len = jnp.array([LEN_SIG // FRAME_SHIFT] * B, jnp.int32)
    aux_len = jnp.array([16, 11], jnp.int32)

    params = init_params(FRAME_SIZE, FEATURE_DIM, HIDDEN_DIM, n_cls=N_CLS)

    fwd = jax.jit(functools.partial(
        net_wrapper_forward,
        frame_size=FRAME_SIZE, frame_shift=FRAME_SHIFT,
        feature_dim=FEATURE_DIM, hidden_dim=HIDDEN_DIM, n_cls=N_CLS))

    signal, classify_out = fwd(params, x, anchor, input_len, aux_len)
    jax.block_until_ready((signal, classify_out))

    assert signal.shape == (B, LEN_SIG)
    assert classify_out.shape == (B, N_CLS)
    assert bool(jnp.all(jnp.isfinite(signal))) and bool(jnp.all(jnp.isfinite(classify_out)))
    print("KERNEL_OK")
</pallas_src>

<mosaic_0001>
module attributes {stable_mosaic.version = 11 : i64} {
  func.func @_main_path_kernel(%arg0: i32, %arg1: i32, %arg2: memref<1x32x128xbf16, #tpu.memory_space<vmem>>, %arg3: memref<1x64x1xf32, #tpu.memory_space<vmem>>, %arg4: memref<64x32xbf16, #tpu.memory_space<vmem>>, %arg5: memref<64x1xf32, #tpu.memory_space<vmem>>, %arg6: memref<32x64xbf16, #tpu.memory_space<vmem>>, %arg7: memref<32x1xf32, #tpu.memory_space<vmem>>, %arg8: memref<1x32x128xbf16, #tpu.memory_space<vmem>>) attributes {dimension_semantics = [#tpu.dimension_semantics<parallel>, #tpu.dimension_semantics<parallel>], iteration_bounds = array<i64: 2, 1>, scalar_prefetch = 0 : i64, scratch_operands = 0 : i64, tpu.core_type = #tpu.core_type<tc>, window_params = [{transform_indices = @transform_0, window_bounds = array<i64: 1, 32, 128>}, {transform_indices = @transform_1, window_bounds = array<i64: 1, 64, 1>}, {pipeline_mode = #tpu.pipeline_mode<synchronous>, transform_indices = @transform_2, window_bounds = array<i64: 64, 32>}, {pipeline_mode = #tpu.pipeline_mode<synchronous>, transform_indices = @transform_3, window_bounds = array<i64: 64, 1>}, {pipeline_mode = #tpu.pipeline_mode<synchronous>, transform_indices = @transform_4, window_bounds = array<i64: 32, 64>}, {pipeline_mode = #tpu.pipeline_mode<synchronous>, transform_indices = @transform_5, window_bounds = array<i64: 32, 1>}, {transform_indices = @transform_6, window_bounds = array<i64: 1, 32, 128>}]} {
    %c0 = arith.constant 0 : index
    %c0_0 = arith.constant 0 : index
    %c0_1 = arith.constant 0 : index
    %0 = vector.load %arg2[%c0, %c0_0, %c0_1] : memref<1x32x128xbf16, #tpu.memory_space<vmem>>, vector<1x32x128xbf16>
    %1 = vector.shape_cast %0 : vector<1x32x128xbf16> to vector<32x128xbf16>
    %c0_2 = arith.constant 0 : index
    %c0_3 = arith.constant 0 : index
    %2 = vector.load %arg4[%c0_2, %c0_3] : memref<64x32xbf16, #tpu.memory_space<vmem>>, vector<64x32xbf16>
    %cst = arith.constant dense<0.000000e+00> : vector<64x128xf32>
    %3 = tpu.matmul %2, %1, %cst {dimension_numbers = #tpu.dot_dimension_numbers<[1], [0], [0], [1], [0, 0, 1, 1], [], []>} : vector<64x32xbf16>, vector<32x128xbf16>, vector<64x128xf32> -> vector<64x128xf32>
    %c0_4 = arith.constant 0 : index
    %c0_5 = arith.constant 0 : index
    %4 = vector.load %arg5[%c0_4, %c0_5] : memref<64x1xf32, #tpu.memory_space<vmem>>, vector<64x1xf32>
    %5 = vector.broadcast %4 : vector<64x1xf32> to vector<64x128xf32>
    %6 = arith.addf %3, %5 : vector<64x128xf32>
    %c0_6 = arith.constant 0 : index
    %c0_7 = arith.constant 0 : index
    %c0_8 = arith.constant 0 : index
    %7 = vector.load %arg3[%c0_6, %c0_7, %c0_8] : memref<1x64x1xf32, #tpu.memory_space<vmem>>, vector<1x64x1xf32>
    %8 = vector.shape_cast %7 : vector<1x64x1xf32> to vector<64x1xf32>
    %cst_9 = arith.constant 4.000000e+00 : f32
    %9 = vector.broadcast %cst_9 : f32 to vector<64x1xf32>
    %10 = arith.mulf %9, %8 : vector<64x1xf32>
    %11 = vector.broadcast %10 : vector<64x1xf32> to vector<64x128xf32>
    %12 = arith.addf %6, %11 : vector<64x128xf32>
    %c0_10 = arith.constant 0 : index
    %c0_11 = arith.constant 0 : index
    %13 = vector.load %arg6[%c0_10, %c0_11] : memref<32x64xbf16, #tpu.memory_space<vmem>>, vector<32x64xbf16>
    %14 = arith.truncf %12 : vector<64x128xf32> to vector<64x128xbf16>
    %cst_12 = arith.constant dense<0.000000e+00> : vector<32x128xf32>
    %15 = tpu.matmul %13, %14, %cst_12 {dimension_numbers = #tpu.dot_dimension_numbers<[1], [0], [0], [1], [0, 0, 1, 1], [], []>} : vector<32x64xbf16>, vector<64x128xbf16>, vector<32x128xf32> -> vector<32x128xf32>
    %c0_13 = arith.constant 0 : index
    %c0_14 = arith.constant 0 : index
    %16 = vector.load %arg7[%c0_13, %c0_14] : memref<32x1xf32, #tpu.memory_space<vmem>>, vector<32x1xf32>
    %17 = vector.broadcast %16 : vector<32x1xf32> to vector<32x128xf32>
    %18 = arith.addf %15, %17 : vector<32x128xf32>
    %19 = arith.truncf %18 : vector<32x128xf32> to vector<32x128xbf16>
    %c0_15 = arith.constant 0 : index
    %c0_16 = arith.constant 0 : index
    %c0_17 = arith.constant 0 : index
    %20 = vector.load %arg8[%c0_15, %c0_16, %c0_17] : memref<1x32x128xbf16, #tpu.memory_space<vmem>>, vector<1x32x128xbf16>
    %21 = vector.shape_cast %20 : vector<1x32x128xbf16> to vector<32x128xbf16>
    %22 = vector.shape_cast %19 : vector<32x128xbf16> to vector<1x32x128xbf16>
    tpu.vector_store %arg8[%c0_15, %c0_16, %c0_17], %22 {strides = array<i32>} : memref<1x32x128xbf16, #tpu.memory_space<vmem>>, vector<1x32x128xbf16>,
    return
  }
  func.func @transform_0(%arg0: i32, %arg1: i32) -> (i32, i32, i32) {
    %c0_i32 = arith.constant 0 : i32
    %c0_i32_0 = arith.constant 0 : i32
    return %arg0, %c0_i32, %arg1 : i32, i32, i32
  }
  func.func @transform_1(%arg0: i32, %arg1: i32) -> (i32, i32, i32) {
    %c0_i32 = arith.constant 0 : i32
    %c0_i32_0 = arith.constant 0 : i32
    %c0_i32_1 = arith.constant 0 : i32
    return %arg0, %c0_i32, %c0_i32_0 : i32, i32, i32
  }
  func.func @transform_2(%arg0: i32, %arg1: i32) -> (i32, i32) {
    %c0_i32 = arith.constant 0 : i32
    %c0_i32_0 = arith.constant 0 : i32
    %c0_i32_1 = arith.constant 0 : i32
    return %c0_i32, %c0_i32_0 : i32, i32
  }
  func.func @transform_3(%arg0: i32, %arg1: i32) -> (i32, i32) {
    %c0_i32 = arith.constant 0 : i32
    %c0_i32_0 = arith.constant 0 : i32
    %c0_i32_1 = arith.constant 0 : i32
    return %c0_i32, %c0_i32_0 : i32, i32
  }
  func.func @transform_4(%arg0: i32, %arg1: i32) -> (i32, i32) {
    %c0_i32 = arith.constant 0 : i32
    %c0_i32_0 = arith.constant 0 : i32
    %c0_i32_1 = arith.constant 0 : i32
    return %c0_i32, %c0_i32_0 : i32, i32
  }
  func.func @transform_5(%arg0: i32, %arg1: i32) -> (i32, i32) {
    %c0_i32 = arith.constant 0 : i32
    %c0_i32_0 = arith.constant 0 : i32
    %c0_i32_1 = arith.constant 0 : i32
    return %c0_i32, %c0_i32_0 : i32, i32
  }
  func.func @transform_6(%arg0: i32, %arg1: i32) -> (i32, i32, i32) {
    %c0_i32 = arith.constant 0 : i32
    %c0_i32_0 = arith.constant 0 : i32
    return %arg0, %c0_i32, %arg1 : i32, i32, i32
  }
}

module attributes {stable_mosaic.version = 11 : i64} {
  func.func @_aux_cls_kernel(%arg0: i32, %arg1: memref<2xi32, #tpu.memory_space<smem>>, %arg2: memref<1x16x32xbf16, #tpu.memory_space<vmem>>, %arg3: memref<32x64xbf16, #tpu.memory_space<vmem>>, %arg4: memref<1x64xf32, #tpu.memory_space<vmem>>, %arg5: memref<1x64xf32, #tpu.memory_space<vmem>>, %arg6: memref<1x64xf32, #tpu.memory_space<vmem>>, %arg7: memref<64x32xbf16, #tpu.memory_space<vmem>>, %arg8: memref<1x32xf32, #tpu.memory_space<vmem>>, %arg9: memref<32x32xbf16, #tpu.memory_space<vmem>>, %arg10: memref<32x32xbf16, #tpu.memory_space<vmem>>, %arg11: memref<32x32xbf16, #tpu.memory_space<vmem>>, %arg12: memref<1x32xf32, #tpu.memory_space<vmem>>, %arg13: memref<1x32xf32, #tpu.memory_space<vmem>>, %arg14: memref<1x32xf32, #tpu.memory_space<vmem>>, %arg15: memref<32x32xbf16, #tpu.memory_space<vmem>>, %arg16: memref<1x32xf32, #tpu.memory_space<vmem>>, %arg17: memref<1x64xf32, #tpu.memory_space<vmem>>, %arg18: memref<1x64xf32, #tpu.memory_space<vmem>>, %arg19: memref<64x64xbf16, #tpu.memory_space<vmem>>, %arg20: memref<1x64xf32, #tpu.memory_space<vmem>>, %arg21: memref<1x64xf32, #tpu.memory_space<vmem>>, %arg22: memref<1x64xf32, #tpu.memory_space<vmem>>, %arg23: memref<64x128xbf16, #tpu.memory_space<vmem>>, %arg24: memref<1x128xf32, #tpu.memory_space<vmem>>, %arg25: memref<1x1x64xf32, #tpu.memory_space<vmem>>, %arg26: memref<1x1x128xf32, #tpu.memory_space<vmem>>) attributes {dimension_semantics = [#tpu.dimension_semantics<parallel>], iteration_bounds = array<i64: 2>, scalar_prefetch = 1 : i64, scratch_operands = 0 : i64, tpu.core_type = #tpu.core_type<tc>, window_params = [{transform_indices = @transform_0, window_bounds = array<i64: 1, 16, 32>}, {pipeline_mode = #tpu.pipeline_mode<synchronous>, transform_indices = @transform_1, window_bounds = array<i64: 32, 64>}, {pipeline_mode = #tpu.pipeline_mode<synchronous>, transform_indices = @transform_2, window_bounds = array<i64: 1, 64>}, {pipeline_mode = #tpu.pipeline_mode<synchronous>, transform_indices = @transform_3, window_bounds = array<i64: 1, 64>}, {pipeline_mode = #tpu.pipeline_mode<synchronous>, transform_indices = @transform_4, window_bounds = array<i64: 1, 64>}, {pipeline_mode = #tpu.pipeline_mode<synchronous>, transform_indices = @transform_5, window_bounds = array<i64: 64, 32>}, {pipeline_mode = #tpu.pipeline_mode<synchronous>, transform_indices = @transform_6, window_bounds = array<i64: 1, 32>}, {pipeline_mode = #tpu.pipeline_mode<synchronous>, transform_indices = @transform_7, window_bounds = array<i64: 32, 32>}, {pipeline_mode = #tpu.pipeline_mode<synchronous>, transform_indices = @transform_8, window_bounds = array<i64: 32, 32>}, {pipeline_mode = #tpu.pipeline_mode<synchronous>, transform_indices = @transform_9, window_bounds = array<i64: 32, 32>}, {pipeline_mode = #tpu.pipeline_mode<synchronous>, transform_indices = @transform_10, window_bounds = array<i64: 1, 32>}, {pipeline_mode = #tpu.pipeline_mode<synchronous>, transform_indices = @transform_11, window_bounds = array<i64: 1, 32>}, {pipeline_mode = #tpu.pipeline_mode<synchronous>, transform_indices = @transform_12, window_bounds = array<i64: 1, 32>}, {pipeline_mode = #tpu.pipeline_mode<synchronous>, transform_indices = @transform_13, window_bounds = array<i64: 32, 32>}, {pipeline_mode = #tpu.pipeline_mode<synchronous>, transform_indices = @transform_14, window_bounds = array<i64: 1, 32>}, {pipeline_mode = #tpu.pipeline_mode<synchronous>, transform_indices = @transform_15, window_bounds = array<i64: 1, 64>}, {pipeline_mode = #tpu.pipeline_mode<synchronous>, transform_indices = @transform_16, window_bounds = array<i64: 1, 64>}, {pipeline_mode = #tpu.pipeline_mode<synchronous>, transform_indices = @transform_17, window_bounds = array<i64: 64, 64>}, {pipeline_mode = #tpu.pipeline_mode<synchronous>, transform_indices = @transform_18, window_bounds = array<i64: 1, 64>}, {pipeline_mode = #tpu.pipeline_mode<synchronous>, transform_indices = @transform_19, window_bounds = array<i64: 1, 64>}, {pipeline_mode = #tpu.pipeline_mode<synchronous>, transform_indices = @transform_20, window_bounds = array<i64: 1, 64>}, {pipeline_mode = #tpu.pipeline_mode<synchronous>, transform_indices = @transform_21, window_bounds = array<i64: 64, 128>}, {pipeline_mode = #tpu.pipeline_mode<synchronous>, transform_indices = @transform_22, window_bounds = array<i64: 1, 128>}, {transform_indices = @transform_23, window_bounds = array<i64: 1, 1, 64>}, {transform_indices = @transform_24, window_bounds = array<i64: 1, 1, 128>}]} {
    %0 = arith.index_cast %arg0 : i32 to index
    %1 = memref.load %arg1[%0] : memref<2xi32, #tpu.memory_space<smem>>
    %2 = arith.sitofp %1 : i32 to f32
    %cst = arith.constant 1.000000e+00 : f32
    %3 = arith.maximumf %2, %cst : f32
    %c0 = arith.constant 0 : index
    %c0_0 = arith.constant 0 : index
    %c0_1 = arith.constant 0 : index
    %4 = vector.load %arg2[%c0, %c0_0, %c0_1] : memref<1x16x32xbf16, #tpu.memory_space<vmem>>, vector<1x16x32xbf16>
    %5 = vector.shape_cast %4 : vector<1x16x32xbf16> to vector<16x32xbf16>
    %6 = tpu.iota {dimensions = array<i32: 0>} : vector<16x1xi32>
    %7 = vector.broadcast %1 : i32 to vector<16x1xi32>
    %8 = arith.cmpi slt, %6, %7 : vector<16x1xi32>
    %9 = arith.extui %8 : vector<16x1xi1> to vector<16x1xi32>
    %10 = arith.sitofp %9 : vector<16x1xi32> to vector<16x1xf32>
    %11 = tpu.iota {dimensions = array<i32: 1>} : vector<1x16xi32>
    %12 = vector.broadcast %1 : i32 to vector<1x16xi32>
    %13 = arith.cmpi slt, %11, %12 : vector<1x16xi32>
    %14 = arith.extui %13 : vector<1x16xi1> to vector<1x16xi32>
    %15 = arith.sitofp %14 : vector<1x16xi32> to vector<1x16xf32>
    %16 = arith.truncf %15 : vector<1x16xf32> to vector<1x16xbf16>
    %c0_2 = arith.constant 0 : index
    %c0_3 = arith.constant 0 : index
    %17 = vector.load %arg3[%c0_2, %c0_3] : memref<32x64xbf16, #tpu.memory_space<vmem>>, vector<32x64xbf16>
    %cst_4 = arith.constant dense<0.000000e+00> : vector<16x64xf32>
    %18 = tpu.matmul %5, %17, %cst_4 {dimension_numbers = #tpu.dot_dimension_numbers<[1], [0], [0], [1], [0, 0, 1, 1], [], []>} : vector<16x32xbf16>, vector<32x64xbf16>, vector<16x64xf32> -> vector<16x64xf32>
    %c0_5 = arith.constant 0 : index
    %c0_6 = arith.constant 0 : index
    %19 = vector.load %arg4[%c0_5, %c0_6] : memref<1x64xf32, #tpu.memory_space<vmem>>, vector<1x64xf32>
    %20 = vector.broadcast %19 : vector<1x64xf32> to vector<16x64xf32>
    %21 = arith.addf %18, %20 : vector<16x64xf32>
    %22 = vector.broadcast %10 : vector<16x1xf32> to vector<16x64xf32>
    %23 = arith.mulf %21, %22 : vector<16x64xf32>
    %cst_7 = arith.constant 6.400000e+01 : f32
    %24 = arith.mulf %3, %cst_7 : f32
    %25 = vector.shape_cast %23 : vector<16x64xf32> to vector<1x16x64xf32>
    %cst_8 = arith.constant dense<0.000000e+00> : vector<1xf32>
    %26 = vector.multi_reduction <add>, %25, %cst_8 [1, 2] : vector<1x16x64xf32> to vector<1xf32>
    %27 = vector.shape_cast %26 : vector<1xf32> to vector<1x1x1xf32>
    %28 = vector.extract %27[0, 0, 0] : f32 from vector<1x1x1xf32>
    %29 = arith.divf %28, %24 : f32
    %30 = arith.mulf %23, %21 : vector<16x64xf32>
    %31 = vector.shape_cast %30 : vector<16x64xf32> to vector<1x16x64xf32>
    %cst_9 = arith.constant dense<0.000000e+00> : vector<1xf32>
    %32 = vector.multi_reduction <add>, %31, %cst_9 [1, 2] : vector<1x16x64xf32> to vector<1xf32>
    %33 = vector.shape_cast %32 : vector<1xf32> to vector<1x1x1xf32>
    %34 = vector.extract %33[0, 0, 0] : f32 from vector<1x1x1xf32>
    %35 = arith.divf %34, %24 : f32
    %36 = arith.mulf %29, %29 : f32
    %37 = arith.subf %35, %36 : f32
    %cst_10 = arith.constant 0.000000e+00 : f32
    %38 = arith.maximumf %37, %cst_10 : f32
    %c0_11 = arith.constant 0 : index
    %c0_12 = arith.constant 0 : index
    %39 = vector.load %arg5[%c0_11, %c0_12] : memref<1x64xf32, #tpu.memory_space<vmem>>, vector<1x64xf32>
    %40 = vector.broadcast %29 : f32 to vector<16x64xf32>
    %41 = arith.subf %21, %40 : vector<16x64xf32>
    %42 = vector.broadcast %39 : vector<1x64xf32> to vector<16x64xf32>
    %43 = arith.mulf %42, %41 : vector<16x64xf32>
    %cst_13 = arith.constant 9.99999974E-6 : f32
    %44 = arith.addf %38, %cst_13 : f32
    %45 = math.rsqrt %44 : f32
    %46 = vector.broadcast %45 : f32 to vector<16x64xf32>
    %47 = arith.mulf %43, %46 : vector<16x64xf32>
    %c0_14 = arith.constant 0 : index
    %c0_15 = arith.constant 0 : index
    %48 = vector.load %arg6[%c0_14, %c0_15] : memref<1x64xf32, #tpu.memory_space<vmem>>, vector<1x64xf32>
    %49 = vector.broadcast %48 : vector<1x64xf32> to vector<16x64xf32>
    %50 = arith.addf %47, %49 : vector<16x64xf32>
    %51 = vector.broadcast %10 : vector<16x1xf32> to vector<16x64xf32>
    %52 = arith.mulf %50, %51 : vector<16x64xf32>
    %53 = arith.truncf %52 : vector<16x64xf32> to vector<16x64xbf16>
    %c0_16 = arith.constant 0 : index
    %c0_17 = arith.constant 0 : index
    %54 = vector.load %arg7[%c0_16, %c0_17] : memref<64x32xbf16, #tpu.memory_space<vmem>>, vector<64x32xbf16>
    %cst_18 = arith.constant dense<0.000000e+00> : vector<16x32xf32>
    %55 = tpu.matmul %53, %54, %cst_18 {dimension_numbers = #tpu.dot_dimension_numbers<[1], [0], [0], [1], [0, 0, 1, 1], [], []>} : vector<16x64xbf16>, vector<64x32xbf16>, vector<16x32xf32> -> vector<16x32xf32>
    %c0_19 = arith.constant 0 : index
    %c0_20 = arith.constant 0 : index
    %56 = vector.load %arg8[%c0_19, %c0_20] : memref<1x32xf32, #tpu.memory_space<vmem>>, vector<1x32xf32>
    %57 = vector.broadcast %56 : vector<1x32xf32> to vector<16x32xf32>
    %58 = arith.addf %55, %57 : vector<16x32xf32>
    %cst_21 = arith.constant 0.000000e+00 : f32
    %59 = vector.broadcast %cst_21 : f32 to vector<16x32xf32>
    %60 = arith.maximumf %58, %59 : vector<16x32xf32>
    %61 = vector.broadcast %10 : vector<16x1xf32> to vector<16x32xf32>
    %62 = arith.mulf %60, %61 : vector<16x32xf32>
    %63 = arith.truncf %62 : vector<16x32xf32> to vector<16x32xbf16>
    %cst_22 = arith.constant dense<0.000000e+00> : vector<1x32xf32>
    %64 = tpu.matmul %16, %63, %cst_22 {dimension_numbers = #tpu.dot_dimension_numbers<[1], [0], [0], [1], [0, 0, 1, 1], [], []>} : vector<1x16xbf16>, vector<16x32xbf16>, vector<1x32xf32> -> vector<1x32xf32>
    %65 = vector.broadcast %3 : f32 to vector<1x32xf32>
    %66 = arith.divf %64, %65 : vector<1x32xf32>
    %67 = arith.mulf %62, %60 : vector<16x32xf32>
    %68 = arith.truncf %67 : vector<16x32xf32> to vector<16x32xbf16>
    %cst_23 = arith.constant dense<0.000000e+00> : vector<1x32xf32>
    %69 = tpu.matmul %16, %68, %cst_23 {dimension_numbers = #tpu.dot_dimension_numbers<[1], [0], [0], [1], [0, 0, 1, 1], [], []>} : vector<1x16xbf16>, vector<16x32xbf16>, vector<1x32xf32> -> vector<1x32xf32>
    %70 = vector.broadcast %3 : f32 to vector<1x32xf32>
    %71 = arith.mulf %70, %66 : vector<1x32xf32>
    %72 = arith.mulf %71, %66 : vector<1x32xf32>
    %73 = arith.subf %69, %72 : vector<1x32xf32>
    %cst_24 = arith.constant 1.000000e+00 : f32
    %74 = arith.subf %3, %cst_24 : f32
    %cst_25 = arith.constant 1.000000e+00 : f32
    %75 = arith.maximumf %74, %cst_25 : f32
    %76 = vector.broadcast %75 : f32 to vector<1x32xf32>
    %77 = arith.divf %73, %76 : vector<1x32xf32>
    %cst_26 = arith.constant 9.99999974E-5 : f32
    %78 = vector.broadcast %cst_26 : f32 to vector<1x32xf32>
    %79 = arith.maximumf %77, %78 : vector<1x32xf32>
    %80 = math.sqrt %79 : vector<1x32xf32>
    %c0_27 = arith.constant 0 : index
    %c0_28 = arith.constant 0 : index
    %81 = vector.load %arg9[%c0_27, %c0_28] : memref<32x32xbf16, #tpu.memory_space<vmem>>, vector<32x32xbf16>
    %cst_29 = arith.constant dense<0.000000e+00> : vector<16x32xf32>
    %82 = tpu.matmul %63, %81, %cst_29 {dimension_numbers = #tpu.dot_dimension_numbers<[1], [0], [0], [1], [0, 0, 1, 1], [], []>} : vector<16x32xbf16>, vector<32x32xbf16>, vector<16x32xf32> -> vector<16x32xf32>
    %83 = arith.truncf %66 : vector<1x32xf32> to vector<1x32xbf16>
    %c0_30 = arith.constant 0 : index
    %c0_31 = arith.constant 0 : index
    %84 = vector.load %arg10[%c0_30, %c0_31] : memref<32x32xbf16, #tpu.memory_space<vmem>>, vector<32x32xbf16>
    %cst_32 = arith.constant dense<0.000000e+00> : vector<1x32xf32>
    %85 = tpu.matmul %83, %84, %cst_32 {dimension_numbers = #tpu.dot_dimension_numbers<[1], [0], [0], [1], [0, 0, 1, 1], [], []>} : vector<1x32xbf16>, vector<32x32xbf16>, vector<1x32xf32> -> vector<1x32xf32>
    %86 = vector.broadcast %85 : vector<1x32xf32> to vector<16x32xf32>
    %87 = arith.addf %82, %86 : vector<16x32xf32>
    %88 = arith.truncf %80 : vector<1x32xf32> to vector<1x32xbf16>
    %c0_33 = arith.constant 0 : index
    %c0_34 = arith.constant 0 : index
    %89 = vector.load %arg11[%c0_33, %c0_34] : memref<32x32xbf16, #tpu.memory_space<vmem>>, vector<32x32xbf16>
    %cst_35 = arith.constant dense<0.000000e+00> : vector<1x32xf32>
    %90 = tpu.matmul %88, %89, %cst_35 {dimension_numbers = #tpu.dot_dimension_numbers<[1], [0], [0], [1], [0, 0, 1, 1], [], []>} : vector<1x32xbf16>, vector<32x32xbf16>, vector<1x32xf32> -> vector<1x32xf32>
    %91 = vector.broadcast %90 : vector<1x32xf32> to vector<16x32xf32>
    %92 = arith.addf %87, %91 : vector<16x32xf32>
    %c0_36 = arith.constant 0 : index
    %c0_37 = arith.constant 0 : index
    %93 = vector.load %arg12[%c0_36, %c0_37] : memref<1x32xf32, #tpu.memory_space<vmem>>, vector<1x32xf32>
    %94 = vector.broadcast %93 : vector<1x32xf32> to vector<16x32xf32>
    %95 = arith.addf %92, %94 : vector<16x32xf32>
    %cst_38 = arith.constant 0.000000e+00 : f32
    %96 = vector.broadcast %cst_38 : f32 to vector<16x32xf32>
    %97 = arith.maximumf %95, %96 : vector<16x32xf32>
    %c0_39 = arith.constant 0 : index
    %c0_40 = arith.constant 0 : index
    %98 = vector.load %arg13[%c0_39, %c0_40] : memref<1x32xf32, #tpu.memory_space<vmem>>, vector<1x32xf32>
    %99 = vector.broadcast %98 : vector<1x32xf32> to vector<16x32xf32>
    %100 = arith.mulf %97, %99 : vector<16x32xf32>
    %c0_41 = arith.constant 0 : index
    %c0_42 = arith.constant 0 : index
    %101 = vector.load %arg14[%c0_41, %c0_42] : memref<1x32xf32, #tpu.memory_space<vmem>>, vector<1x32xf32>
    %102 = vector.broadcast %101 : vector<1x32xf32> to vector<16x32xf32>
    %103 = arith.addf %100, %102 : vector<16x32xf32>
    %104 = math.tanh %103 : vector<16x32xf32>
    %105 = arith.truncf %104 : vector<16x32xf32> to vector<16x32xbf16>
    %c0_43 = arith.constant 0 : index
    %c0_44 = arith.constant 0 : index
    %106 = vector.load %arg15[%c0_43, %c0_44] : memref<32x32xbf16, #tpu.memory_space<vmem>>, vector<32x32xbf16>
    %cst_45 = arith.constant dense<0.000000e+00> : vector<16x32xf32>
    %107 = tpu.matmul %105, %106, %cst_45 {dimension_numbers = #tpu.dot_dimension_numbers<[1], [0], [0], [1], [0, 0, 1, 1], [], []>} : vector<16x32xbf16>, vector<32x32xbf16>, vector<16x32xf32> -> vector<16x32xf32>
    %c0_46 = arith.constant 0 : index
    %c0_47 = arith.constant 0 : index
    %108 = vector.load %arg16[%c0_46, %c0_47] : memref<1x32xf32, #tpu.memory_space<vmem>>, vector<1x32xf32>
    %109 = vector.broadcast %108 : vector<1x32xf32> to vector<16x32xf32>
    %110 = arith.addf %107, %109 : vector<16x32xf32>
    %cst_48 = arith.constant -1.000000e+30 : f32
    %111 = vector.shape_cast %8 : vector<16x1xi1> to vector<16x1xi1>
    %112 = vector.broadcast %111 : vector<16x1xi1> to vector<16x32xi1>
    %113 = vector.broadcast %cst_48 : f32 to vector<16x32xf32>
    %114 = arith.select %112, %110, %113 : vector<16x32xi1>, vector<16x32xf32>
    %cst_49 = arith.constant dense<0xFF800000> : vector<32xf32>
    %115 = vector.multi_reduction <maximumf>, %114, %cst_49 [0] : vector<16x32xf32> to vector<32xf32>
    %116 = vector.shape_cast %115 : vector<32xf32> to vector<1x32xf32>
    %117 = vector.broadcast %116 : vector<1x32xf32> to vector<16x32xf32>
    %118 = arith.subf %114, %117 : vector<16x32xf32>
    %119 = math.exp %118 : vector<16x32xf32>
    %120 = vector.broadcast %10 : vector<16x1xf32> to vector<16x32xf32>
    %121 = arith.mulf %119, %120 : vector<16x32xf32>
    %122 = arith.truncf %121 : vector<16x32xf32> to vector<16x32xbf16>
    %cst_50 = arith.constant dense<0.000000e+00> : vector<1x32xf32>
    %123 = tpu.matmul %16, %122, %cst_50 {dimension_numbers = #tpu.dot_dimension_numbers<[1], [0], [0], [1], [0, 0, 1, 1], [], []>} : vector<1x16xbf16>, vector<16x32xbf16>, vector<1x32xf32> -> vector<1x32xf32>
    %cst_51 = arith.constant 1.000000e-30 : f32
    %124 = vector.broadcast %cst_51 : f32 to vector<1x32xf32>
    %125 = arith.maximumf %123, %124 : vector<1x32xf32>
    %126 = tpu.reciprocal %125 {approx = true} : vector<1x32xf32> -> vector<1x32xf32>
    %127 = arith.mulf %62, %121 : vector<16x32xf32>
    %128 = arith.truncf %127 : vector<16x32xf32> to vector<16x32xbf16>
    %cst_52 = arith.constant dense<0.000000e+00> : vector<1x32xf32>
    %129 = tpu.matmul %16, %128, %cst_52 {dimension_numbers = #tpu.dot_dimension_numbers<[1], [0], [0], [1], [0, 0, 1, 1], [], []>} : vector<1x16xbf16>, vector<16x32xbf16>, vector<1x32xf32> -> vector<1x32xf32>
    %130 = arith.mulf %129, %126 : vector<1x32xf32>
    %131 = arith.mulf %62, %62 : vector<16x32xf32>
    %132 = arith.mulf %131, %121 : vector<16x32xf32>
    %133 = arith.truncf %132 : vector<16x32xf32> to vector<16x32xbf16>
    %cst_53 = arith.constant dense<0.000000e+00> : vector<1x32xf32>
    %134 = tpu.matmul %16, %133, %cst_53 {dimension_numbers = #tpu.dot_dimension_numbers<[1], [0], [0], [1], [0, 0, 1, 1], [], []>} : vector<1x16xbf16>, vector<16x32xbf16>, vector<1x32xf32> -> vector<1x32xf32>
    %135 = arith.mulf %134, %126 : vector<1x32xf32>
    %136 = arith.mulf %130, %130 : vector<1x32xf32>
    %137 = arith.subf %135, %136 : vector<1x32xf32>
    %cst_54 = arith.constant 9.99999974E-5 : f32
    %138 = vector.broadcast %cst_54 : f32 to vector<1x32xf32>
    %139 = arith.maximumf %137, %138 : vector<1x32xf32>
    %140 = math.sqrt %139 : vector<1x32xf32>
    %141 = tpu.concatenate %130, %140 in 1 : vector<1x32xf32>, vector<1x32xf32> -> vector<1x64xf32>
    %c0_55 = arith.constant 0 : index
    %c0_56 = arith.constant 0 : index
    %142 = vector.load %arg17[%c0_55, %c0_56] : memref<1x64xf32, #tpu.memory_space<vmem>>, vector<1x64xf32>
    %143 = arith.mulf %141, %142 : vector<1x64xf32>
    %c0_57 = arith.constant 0 : index
    %c0_58 = arith.constant 0 : index
    %144 = vector.load %arg18[%c0_57, %c0_58] : memref<1x64xf32, #tpu.memory_space<vmem>>, vector<1x64xf32>
    %145 = arith.addf %143, %144 : vector<1x64xf32>
    %146 = arith.truncf %145 : vector<1x64xf32> to vector<1x64xbf16>
    %c0_59 = arith.constant 0 : index
    %c0_60 = arith.constant 0 : index
    %147 = vector.load %arg19[%c0_59, %c0_60] : memref<64x64xbf16, #tpu.memory_space<vmem>>, vector<64x64xbf16>
    %cst_61 = arith.constant dense<0.000000e+00> : vector<1x64xf32>
    %148 = tpu.matmul %146, %147, %cst_61 {dimension_numbers = #tpu.dot_dimension_numbers<[1], [0], [0], [1], [0, 0, 1, 1], [], []>} : vector<1x64xbf16>, vector<64x64xbf16>, vector<1x64xf32> -> vector<1x64xf32>
    %c0_62 = arith.constant 0 : index
    %c0_63 = arith.constant 0 : index
    %149 = vector.load %arg20[%c0_62, %c0_63] : memref<1x64xf32, #tpu.memory_space<vmem>>, vector<1x64xf32>
    %150 = arith.addf %148, %149 : vector<1x64xf32>
    %c0_64 = arith.constant 0 : index
    %c0_65 = arith.constant 0 : index
    %151 = vector.load %arg21[%c0_64, %c0_65] : memref<1x64xf32, #tpu.memory_space<vmem>>, vector<1x64xf32>
    %152 = arith.mulf %150, %151 : vector<1x64xf32>
    %c0_66 = arith.constant 0 : index
    %c0_67 = arith.constant 0 : index
    %153 = vector.load %arg22[%c0_66, %c0_67] : memref<1x64xf32, #tpu.memory_space<vmem>>, vector<1x64xf32>
    %154 = arith.addf %152, %153 : vector<1x64xf32>
    %c0_68 = arith.constant 0 : index
    %c0_69 = arith.constant 0 : index
    %c0_70 = arith.constant 0 : index
    %155 = vector.load %arg25[%c0_68, %c0_69, %c0_70] : memref<1x1x64xf32, #tpu.memory_space<vmem>>, vector<1x1x64xf32>
    %156 = vector.shape_cast %155 : vector<1x1x64xf32> to vector<1x64xf32>
    %157 = vector.shape_cast %154 : vector<1x64xf32> to vector<1x1x64xf32>
    tpu.vector_store %arg25[%c0_68, %c0_69, %c0_70], %157 {strides = array<i32>} : memref<1x1x64xf32, #tpu.memory_space<vmem>>, vector<1x1x64xf32>,
    %158 = arith.mulf %154, %154 : vector<1x64xf32>
    %159 = vector.shape_cast %158 : vector<1x64xf32> to vector<1x1x64xf32>
    %cst_71 = arith.constant dense<0.000000e+00> : vector<1xf32>
    %160 = vector.multi_reduction <add>, %159, %cst_71 [1, 2] : vector<1x1x64xf32> to vector<1xf32>
    %161 = vector.shape_cast %160 : vector<1xf32> to vector<1x1x1xf32>
    %162 = vector.extract %161[0, 0, 0] : f32 from vector<1x1x1xf32>
    %cst_72 = arith.constant 1.000000e-24 : f32
    %163 = arith.maximumf %162, %cst_72 : f32
    %164 = math.rsqrt %163 : f32
    %165 = vector.broadcast %164 : f32 to vector<1x64xf32>
    %166 = arith.mulf %154, %165 : vector<1x64xf32>
    %167 = arith.truncf %166 : vector<1x64xf32> to vector<1x64xbf16>
    %c0_73 = arith.constant 0 : index
    %c0_74 = arith.constant 0 : index
    %168 = vector.load %arg23[%c0_73, %c0_74] : memref<64x128xbf16, #tpu.memory_space<vmem>>, vector<64x128xbf16>
    %cst_75 = arith.constant dense<0.000000e+00> : vector<1x128xf32>
    %169 = tpu.matmul %167, %168, %cst_75 {dimension_numbers = #tpu.dot_dimension_numbers<[1], [0], [0], [1], [0, 0, 1, 1], [], []>} : vector<1x64xbf16>, vector<64x128xbf16>, vector<1x128xf32> -> vector<1x128xf32>
    %c0_76 = arith.constant 0 : index
    %c0_77 = arith.constant 0 : index
    %170 = vector.load %arg24[%c0_76, %c0_77] : memref<1x128xf32, #tpu.memory_space<vmem>>, vector<1x128xf32>
    %171 = arith.addf %169, %170 : vector<1x128xf32>
    %c0_78 = arith.constant 0 : index
    %c0_79 = arith.constant 0 : index
    %c0_80 = arith.constant 0 : index
    %172 = vector.load %arg26[%c0_78, %c0_79, %c0_80] : memref<1x1x128xf32, #tpu.memory_space<vmem>>, vector<1x1x128xf32>
    %173 = vector.shape_cast %172 : vector<1x1x128xf32> to vector<1x128xf32>
    %174 = vector.shape_cast %171 : vector<1x128xf32> to vector<1x1x128xf32>
    tpu.vector_store %arg26[%c0_78, %c0_79, %c0_80], %174 {strides = array<i32>} : memref<1x1x128xf32, #tpu.memory_space<vmem>>, vector<1x1x128xf32>,
    return
  }
  func.func @transform_0(%arg0: i32, %arg1: memref<2xi32, #tpu.memory_space<smem>>) -> (i32, i32, i32) {
    %c0_i32 = arith.constant 0 : i32
    %c0_i32_0 = arith.constant 0 : i32
    %c0_i32_1 = arith.constant 0 : i32
    return %arg0, %c0_i32, %c0_i32_0 : i32, i32, i32
  }
  func.func @transform_1(%arg0: i32, %arg1: memref<2xi32, #tpu.memory_space<smem>>) -> (i32, i32) {
    %c0_i32 = arith.constant 0 : i32
    %c0_i32_0 = arith.constant 0 : i32
    %c0_i32_1 = arith.constant 0 : i32
    return %c0_i32, %c0_i32_0 : i32, i32
  }
  func.func @transform_2(%arg0: i32, %arg1: memref<2xi32, #tpu.memory_space<smem>>) -> (i32, i32) {
    %c0_i32 = arith.constant 0 : i32
    %c0_i32_0 = arith.constant 0 : i32
    %c0_i32_1 = arith.constant 0 : i32
    return %c0_i32, %c0_i32_0 : i32, i32
  }
  func.func @transform_3(%arg0: i32, %arg1: memref<2xi32, #tpu.memory_space<smem>>) -> (i32, i32) {
    %c0_i32 = arith.constant 0 : i32
    %c0_i32_0 = arith.constant 0 : i32
    %c0_i32_1 = arith.constant 0 : i32
    return %c0_i32, %c0_i32_0 : i32, i32
  }
  func.func @transform_4(%arg0: i32, %arg1: memref<2xi32, #tpu.memory_space<smem>>) -> (i32, i32) {
    %c0_i32 = arith.constant 0 : i32
    %c0_i32_0 = arith.constant 0 : i32
    %c0_i32_1 = arith.constant 0 : i32
    return %c0_i32, %c0_i32_0 : i32, i32
  }
  func.func @transform_5(%arg0: i32, %arg1: memref<2xi32, #tpu.memory_space<smem>>) -> (i32, i32) {
    %c0_i32 = arith.constant 0 : i32
    %c0_i32_0 = arith.constant 0 : i32
    %c0_i32_1 = arith.constant 0 : i32
    return %c0_i32, %c0_i32_0 : i32, i32
  }
  func.func @transform_6(%arg0: i32, %arg1: memref<2xi32, #tpu.memory_space<smem>>) -> (i32, i32) {
    %c0_i32 = arith.constant 0 : i32
    %c0_i32_0 = arith.constant 0 : i32
    %c0_i32_1 = arith.constant 0 : i32
    return %c0_i32, %c0_i32_0 : i32, i32
  }
  func.func @transform_7(%arg0: i32, %arg1: memref<2xi32, #tpu.memory_space<smem>>) -> (i32, i32) {
    %c0_i32 = arith.constant 0 : i32
    %c0_i32_0 = arith.constant 0 : i32
    %c0_i32_1 = arith.constant 0 : i32
    return %c0_i32, %c0_i32_0 : i32, i32
  }
  func.func @transform_8(%arg0: i32, %arg1: memref<2xi32, #tpu.memory_space<smem>>) -> (i32, i32) {
    %c0_i32 = arith.constant 0 : i32
    %c0_i32_0 = arith.constant 0 : i32
    %c0_i32_1 = arith.constant 0 : i32
    return %c0_i32, %c0_i32_0 : i32, i32
  }
  func.func @transform_9(%arg0: i32, %arg1: memref<2xi32, #tpu.memory_space<smem>>) -> (i32, i32) {
    %c0_i32 = arith.constant 0 : i32
    %c0_i32_0 = arith.constant 0 : i32
    %c0_i32_1 = arith.constant 0 : i32
    return %c0_i32, %c0_i32_0 : i32, i32
  }
  func.func @transform_10(%arg0: i32, %arg1: memref<2xi32, #tpu.memory_space<smem>>) -> (i32, i32) {
    %c0_i32 = arith.constant 0 : i32
    %c0_i32_0 = arith.constant 0 : i32
    %c0_i32_1 = arith.constant 0 : i32
    return %c0_i32, %c0_i32_0 : i32, i32
  }
  func.func @transform_11(%arg0: i32, %arg1: memref<2xi32, #tpu.memory_space<smem>>) -> (i32, i32) {
    %c0_i32 = arith.constant 0 : i32
    %c0_i32_0 = arith.constant 0 : i32
    %c0_i32_1 = arith.constant 0 : i32
    return %c0_i32, %c0_i32_0 : i32, i32
  }
  func.func @transform_12(%arg0: i32, %arg1: memref<2xi32, #tpu.memory_space<smem>>) -> (i32, i32) {
    %c0_i32 = arith.constant 0 : i32
    %c0_i32_0 = arith.constant 0 : i32
    %c0_i32_1 = arith.constant 0 : i32
    return %c0_i32, %c0_i32_0 : i32, i32
  }
  func.func @transform_13(%arg0: i32, %arg1: memref<2xi32, #tpu.memory_space<smem>>) -> (i32, i32) {
    %c0_i32 = arith.constant 0 : i32
    %c0_i32_0 = arith.constant 0 : i32
    %c0_i32_1 = arith.constant 0 : i32
    return %c0_i32, %c0_i32_0 : i32, i32
  }
  func.func @transform_14(%arg0: i32, %arg1: memref<2xi32, #tpu.memory_space<smem>>) -> (i32, i32) {
    %c0_i32 = arith.constant 0 : i32
    %c0_i32_0 = arith.constant 0 : i32
    %c0_i32_1 = arith.constant 0 : i32
    return %c0_i32, %c0_i32_0 : i32, i32
  }
  func.func @transform_15(%arg0: i32, %arg1: memref<2xi32, #tpu.memory_space<smem>>) -> (i32, i32) {
    %c0_i32 = arith.constant 0 : i32
    %c0_i32_0 = arith.constant 0 : i32
    %c0_i32_1 = arith.constant 0 : i32
    return %c0_i32, %c0_i32_0 : i32, i32
  }
  func.func @transform_16(%arg0: i32, %arg1: memref<2xi32, #tpu.memory_space<smem>>) -> (i32, i32) {
    %c0_i32 = arith.constant 0 : i32
    %c0_i32_0 = arith.constant 0 : i32
    %c0_i32_1 = arith.constant 0 : i32
    return %c0_i32, %c0_i32_0 : i32, i32
  }
  func.func @transform_17(%arg0: i32, %arg1: memref<2xi32, #tpu.memory_space<smem>>) -> (i32, i32) {
    %c0_i32 = arith.constant 0 : i32
    %c0_i32_0 = arith.constant 0 : i32
    %c0_i32_1 = arith.constant 0 : i32
    return %c0_i32, %c0_i32_0 : i32, i32
  }
  func.func @transform_18(%arg0: i32, %arg1: memref<2xi32, #tpu.memory_space<smem>>) -> (i32, i32) {
    %c0_i32 = arith.constant 0 : i32
    %c0_i32_0 = arith.constant 0 : i32
    %c0_i32_1 = arith.constant 0 : i32
    return %c0_i32, %c0_i32_0 : i32, i32
  }
  func.func @transform_19(%arg0: i32, %arg1: memref<2xi32, #tpu.memory_space<smem>>) -> (i32, i32) {
    %c0_i32 = arith.constant 0 : i32
    %c0_i32_0 = arith.constant 0 : i32
    %c0_i32_1 = arith.constant 0 : i32
    return %c0_i32, %c0_i32_0 : i32, i32
  }
  func.func @transform_20(%arg0: i32, %arg1: memref<2xi32, #tpu.memory_space<smem>>) -> (i32, i32) {
    %c0_i32 = arith.constant 0 : i32
    %c0_i32_0 = arith.constant 0 : i32
    %c0_i32_1 = arith.constant 0 : i32
    return %c0_i32, %c0_i32_0 : i32, i32
  }
  func.func @transform_21(%arg0: i32, %arg1: memref<2xi32, #tpu.memory_space<smem>>) -> (i32, i32) {
    %c0_i32 = arith.constant 0 : i32
    %c0_i32_0 = arith.constant 0 : i32
    %c0_i32_1 = arith.constant 0 : i32
    return %c0_i32, %c0_i32_0 : i32, i32
  }
  func.func @transform_22(%arg0: i32, %arg1: memref<2xi32, #tpu.memory_space<smem>>) -> (i32, i32) {
    %c0_i32 = arith.constant 0 : i32
    %c0_i32_0 = arith.constant 0 : i32
    %c0_i32_1 = arith.constant 0 : i32
    return %c0_i32, %c0_i32_0 : i32, i32
  }
  func.func @transform_23(%arg0: i32, %arg1: memref<2xi32, #tpu.memory_space<smem>>) -> (i32, i32, i32) {
    %c0_i32 = arith.constant 0 : i32
    %c0_i32_0 = arith.constant 0 : i32
    %c0_i32_1 = arith.constant 0 : i32
    return %arg0, %c0_i32, %c0_i32_0 : i32, i32, i32
  }
  func.func @transform_24(%arg0: i32, %arg1: memref<2xi32, #tpu.memory_space<smem>>) -> (i32, i32, i32) {
    %c0_i32 = arith.constant 0 : i32
    %c0_i32_0 = arith.constant 0 : i32
    %c0_i32_1 = arith.constant 0 : i32
    return %arg0, %c0_i32, %c0_i32_0 : i32, i32, i32
  }
}

</mosaic_0001>

<bundles_post_ra>
// kernel: net_wrapper_forward.3
= control target key start
LH: loop header
LB: loop body
LE: loop exit
PB: predicated region body
PF: predicated region fallthrough
CT: control target
= control target key end

     0   :  { %s931_s21 = smov 0   ;;  %s933_s22 = smov 0   ;;  %s1045_s0 = inlined_call_operand.vmem [shape: bf16[2,32,128], index: 0, kind: input, shape index: {}]   ;;  %s1046_s1 = inlined_call_operand.vmem [shape: f32[2,64,1], index: 1, kind: input, shape index: {}]   ;;  %s1047_s2 = inlined_call_operand.vmem [shape: bf16[64,32], index: 2, kind: input, shape index: {}]   ;;  %s1048_s3 = inlined_call_operand.vmem [shape: f32[64,1], index: 3, kind: input, shape index: {}]   ;;  %s1049_s4 = inlined_call_operand.vmem [shape: bf16[32,64], index: 4, kind: input, shape index: {}]   ;;  %s1050_s5 = inlined_call_operand.vmem [shape: f32[32,1], index: 5, kind: input, shape index: {}]   ;;  %s1051_s6 = inlined_call_operand.vmem [shape: bf16[2,32,128], index: 6, kind: output, shape index: {}]  }
   0x1   :  { %s935_s23 = smov 0  }
   0x2 LB: > { %s28_s24 = sadd.s32 1, %s889_s22  ;;  %p755_p0 = scmp.ge.s32.totalorder %s893_s23, 1  ;;  %s893_s23 = sphi %s935_s23, %s16_s23   ;;  %s889_s22 = sphi %s933_s22, %s1053_s22   ;;  %s885_s21 = sphi %s931_s21, %s1052_s21  }
   0x3   : > { %p30_p1 = scmp.ge.s32.totalorder %s28_s24, 2  ;;  %p241_p2 = scmp.lt.s32.totalorder %s893_s23, 3 }
   0x5   : > { %s1055_s24 = smov (%p30_p1, %s28_s24), 0  ;;  %p242_p3 = pnand %p755_p0, %p241_p2 }
   0x6   : > { %p282_p4 = scmp.lt.s32.totalorder (!%p242_p3), %s885_s21, 1  ;;  %v865_v0 = vld [vmem:[%s1047_s2] sm:$0xff] (!%p242_p3)   ;;  %vm396_vm0 = vcmask (!%p242_p3), 261120   ;;  %v895_v1 = vmov (!%p242_p3), 0   ;;  %v319_v2 = vld [vmem:[%s1048_s3 + $0x18] sm:$0xff] (!%p242_p3)  ;;  %v317_v4 = vld [vmem:[%s1048_s3 + $0x8] sm:$0xff] (!%p242_p3) }
   0x7   : > { %245 = sbr.rel (%p242_p3) target bundleno = 483 (0x1e3), region = 44  ;;  %816 = vmatprep.mubr.msk.bf16.mxu0 (!%p242_p3), %vm396_vm0, %v865_v0  ;;  %862 = vset.pattern.permute.xlu1 (!%p242_p3), %v895_v1  ;;  %v316_v3 = vld [vmem:[%s1048_s3] sm:$0xff] (!%p242_p3)  ;;  %v318_v11 = vld [vmem:[%s1048_s3 + $0x10] sm:$0xff] (!%p242_p3)  ;;  %v866_v12 = vld [vmem:[%s1047_s2 + $0x8] sm:$0xff] (!%p242_p3)   ;;  %vm580_vm1 = vcmask (!%p242_p3), 523264  }
   0x8   : > { %861 = vset.pattern.permute.xlu0 (!%p242_p3), %v895_v1  ;;  %341 = vperm.xlu1 (!%p242_p3), %862, %v319_v2   ;;  %v867_v14 = vld [vmem:[%s1047_s2 + $0x10] sm:$0xff] (!%p242_p3)   ;;  %v320_v18 = vld [vmem:[%s1048_s3 + $0x20] sm:$0xff] (!%p242_p3)  ;;  %v868_v20 = vld [vmem:[%s1047_s2 + $0x18] sm:$0xff] (!%p242_p3)  }
   0x9   : > { %326 = vperm.xlu0 (!%p242_p3), %861, %v316_v3   ;;  %v321_v21 = vld [vmem:[%s1048_s3 + $0x28] sm:$0xff] (!%p242_p3)  ;;  %v322_v25 = vld [vmem:[%s1048_s3 + $0x30] sm:$0xff] (!%p242_p3)  ;;  %v323_v27 = vld [vmem:[%s1048_s3 + $0x38] sm:$0xff] (!%p242_p3) }
   0xa   : > { %v546_v31 = vld [vmem:[%s1050_s5] sm:$0xff] (!%p242_p3)  ;;  %v547_v32 = vld [vmem:[%s1050_s5 + $0x8] sm:$0xff] (!%p242_p3)  ;;  %v548_v33 = vld [vmem:[%s1050_s5 + $0x10] sm:$0xff] (!%p242_p3) }
   0xb   : > { %v549_v34 = vld [vmem:[%s1050_s5 + $0x18] sm:$0xff] (!%p242_p3)  ;;  %v869_v35 = vld [vmem:[%s1049_s4] sm:$0xff] (!%p242_p3)  }
   0xc   : > { %832 = vmatprep.mubr.msk.bf16.mxu1 (!%p242_p3), %vm580_vm1, %v869_v35 }
   0xd   : > { %331 = vperm.xlu0 (!%p242_p3), %861, %v317_v4  }
   0xe   : > { %s1057_s21 = smov (!%p282_p4, %s885_s21), 1 }
   0xf   : > { %s782_s27 = sshll.u32 %s1057_s21, 4  ;;  %s783_s28 = sshll.u32 %s1057_s21, 6 }
  0x10   : > { %s289_s11 = scalar_lea.vmem %s1045_s0, %s782_s27  ;;  %s971_s14 = scalar_lea.vmem %s1046_s1, %s783_s28 }
  0x11   : > { %v863_v5 = vld [vmem:[%s289_s11] sm:$0xff]   ;;  %v864_v6 = vld [vmem:[%s289_s11 + $0x8] sm:$0xff]   ;;  %v476_v10 = vld [vmem:[%s971_s14 + $0x10] sm:$0xff]  ;;  %336 = vperm.xlu0 %861, %v318_v11   ;;  %s302_s9 = scalar_lea.vmem %s1051_s6, %s782_s27 }
  0x12   : > { %812 = vmatprep.subr.bf16.mxu0 %v863_v5  ;;  %v474_v7 = vld [vmem:[%s971_s14] sm:$0xff]  ;;  %v475_v8 = vld [vmem:[%s971_s14 + $0x8] sm:$0xff]  ;;  %v484_v15 = vmul.f32 4.0, %v476_v10  ;;  %v477_v16 = vld [vmem:[%s971_s14 + $0x18] sm:$0xff] }
  0x13   : > { %813 = vmatpush3.bf16.msra.mxu0 %v863_v5  ;;  %v482_v9 = vmul.f32 4.0, %v474_v7  ;;  %v483_v13 = vmul.f32 4.0, %v475_v8  ;;  %v485_v17 = vmul.f32 4.0, %v477_v16  ;;  %v478_v19 = vld [vmem:[%s971_s14 + $0x20] sm:$0xff]  ;;  %v479_v22 = vld [vmem:[%s971_s14 + $0x28] sm:$0xff]  ;;  %v480_v26 = vld [vmem:[%s971_s14 + $0x30] sm:$0xff] }
  0x14   : > { %814 = vmatprep.subr.bf16.mxu0 %v864_v6  ;;  %v486_v23 = vmul.f32 4.0, %v478_v19  ;;  %v487_v24 = vmul.f32 4.0, %v479_v22  ;;  %v481_v28 = vld [vmem:[%s971_s14 + $0x38] sm:$0xff]  ;;  %v488_v29 = vmul.f32 4.0, %v480_v26  ;;  %v870_v16 = vld [vmem:[%s1049_s4 + $0x8] sm:$0xff]  }
  0x15   : > { %492 = vperm.xlu1 %862, %v482_v9   ;;  %502 = vperm.xlu0 %861, %v484_v15   ;;  %v489_v30 = vmul.f32 4.0, %v481_v28 }
  0x17   : > { %815 = vmatpush3.bf16.msra.mxu0 %v864_v6 }
  0x19   : > { %497 = vperm.xlu1 %862, %v483_v13   ;;  %346 = vperm.xlu0 %861, %v320_v18  }
  0x1a   : > { %817 = vmatmul.mubr.msk.bf16.vlgmr.msra.gmra.mrb[0].mxu0 %vm396_vm0, %v866_v12 }
  0x1b   : > { %820 = vmatprep.mubr.msk.bf16.mxu0 %vm396_vm0, %v867_v14 }
  0x1d   : > { %507 = vperm.xlu1 %862, %v485_v17   ;;  %512 = vperm.xlu0 %861, %v486_v23  }
  0x21   : > { %351 = vperm.xlu1 %862, %v321_v21   ;;  %356 = vperm.xlu0 %861, %v322_v25  }
  0x22   : > { %821 = vmatmul.mubr.msk.bf16.gmra.mrb[4].mxu0 %vm396_vm0, %v868_v20 }
  0x25   : > { %517 = vperm.xlu1 %862, %v487_v24   ;;  %522 = vperm.xlu0 %861, %v488_v29  }
  0x29   : > { %361 = vperm.xlu1 %862, %v323_v27   ;;  %552 = vperm.xlu0 %861, %v546_v31  }
  0x2d   : > { %527 = vperm.xlu1 %862, %v489_v30   ;;  %562 = vperm.xlu0 %861, %v548_v33  }
  0x31   : > { %557 = vperm.xlu1 %862, %v547_v32  }
  0x35   : > { %567 = vperm.xlu1 %862, %v549_v34  }
  0x87   : > { %v342_v37 = vpop.permute.xlu1 %341 }
  0x88   : > { %v327_v36 = vpop.permute.xlu0 %326 }
  0x8c   : > { %v332_v38 = vpop.permute.xlu0 %331 }
  0x90   : > { %v337_v40 = vpop.permute.xlu0 %336 }
  0x94   : > { %v493_v39 = vpop.permute.xlu1 %492  ;;  %v503_v42 = vpop.permute.xlu0 %502 }
  0x98   : > { %v498_v41 = vpop.permute.xlu1 %497  ;;  %v347_v44 = vpop.permute.xlu0 %346 }
  0x9c   : > { %v508_v43 = vpop.permute.xlu1 %507  ;;  %v513_v46 = vpop.permute.xlu0 %512 }
  0xa0   : > { %v352_v45 = vpop.permute.xlu1 %351  ;;  %v357_v58 = vpop.permute.xlu0 %356 }
  0xa4   : > { %v518_v47 = vpop.permute.xlu1 %517  ;;  %v523_v7 = vpop.permute.xlu0 %522 }
  0xa8   : > { %v362_v59 = vpop.permute.xlu1 %361  ;;  %v553_v17 = vpop.permute.xlu0 %552 }
  0xac   : > { %v528_v8 = vpop.permute.xlu1 %527  ;;  %v563_v20 = vpop.permute.xlu0 %562 }
  0xb0   : > { %v558_v18 = vpop.permute.xlu1 %557 }
  0xb4   : > { %v568_v22 = vpop.permute.xlu1 %567 }
  0xed   : > { %v818_v48 = vpop.f32.mrb[0].mxu0 }
  0xee   : > { %v452_v49 = vadd.f32 %v818_v48, %v337_v40  ;;  %v443_v50 = vpop.f32.mrb[1].mxu0 }
  0xef   : > { %v444_v51 = vadd.f32 %v443_v50, %v327_v36  ;;  %v819_v52 = vpop.f32.mrb[2].mxu0 }
  0xf0   : > { %v455_v53 = vadd.f32 %v819_v52, %v342_v37  ;;  %v446_v54 = vpop.f32.mrb[3].mxu0  ;;  %v532_v56 = vadd.f32 %v503_v42, %v452_v49 }
  0xf1   : > { %v447_v55 = vadd.f32 %v446_v54, %v332_v38  ;;  %v530_v60 = vadd.f32 %v493_v39, %v444_v51 }
  0xf2   : > { %v533_v57 = vadd.f32 %v508_v43, %v455_v53 }
  0xf3   : > { %v531_v61 = vadd.f32 %v498_v41, %v447_v55 }
  0xf4   : > { %v543_v62 = vpack.c.bf16 %v533_v57, %v532_v56 }
  0xf5   : > { %v822_v63 = vpop.f32.mrb[4].mxu0  ;;  %v542_v0 = vpack.c.bf16 %v531_v61, %v530_v60 }
  0xf6   : > { %v468_v1 = vadd.f32 %v822_v63, %v357_v58  ;;  %v459_v2 = vpop.f32.mrb[5].mxu0 }
  0xf7   : > { %v460_v3 = vadd.f32 %v459_v2, %v347_v44  ;;  %v823_v4 = vpop.f32.mrb[6].mxu0  ;;  %824 = vmatprep.subr.bf16.mxu1 %v542_v0 }
  0xf8   : > { %v471_v5 = vadd.f32 %v823_v4, %v362_v59  ;;  %v462_v6 = vpop.f32.mrb[7].mxu0  ;;  %825 = vmatpush3.bf16.msra.mxu1 %v542_v0  ;;  %v536_v10 = vadd.f32 %v523_v7, %v468_v1 }
  0xf9   : > { %v463_v9 = vadd.f32 %v462_v6, %v352_v45  ;;  %826 = vmatprep.subr.bf16.mxu1 %v543_v62  ;;  %v534_v12 = vadd.f32 %v513_v46, %v460_v3 }
  0xfa   : > { %v537_v11 = vadd.f32 %v528_v8, %v471_v5 }
  0xfb   : > { %v535_v13 = vadd.f32 %v518_v47, %v463_v9 }
  0xfc   : > { %827 = vmatpush3.bf16.msra.mxu1 %v543_v62  ;;  %v545_v14 = vpack.c.bf16 %v537_v11, %v536_v10 }
  0xfd   : > { %v544_v15 = vpack.c.bf16 %v535_v13, %v534_v12 }
  0xff   : > { %828 = vmatprep.subr.bf16.mxu1 %v544_v15 }
 0x100   : > { %829 = vmatpush3.bf16.msra.mxu1 %v544_v15 }
 0x101   : > { %830 = vmatprep.subr.bf16.mxu1 %v545_v14 }
 0x104   : > { %831 = vmatpush3.bf16.msra.mxu1 %v545_v14 }
 0x107   : > { %833 = vmatmul.mubr.msk.bf16.vlgmr.msra.gmra.mrb[0].mxu1 %vm580_vm1, %v870_v16 }
 0x1da   : > { %v834_v19 = vpop.f32.mrb[0].mxu1 }
 0x1db   : > { %v621_v21 = vpop.f32.mrb[1].mxu1  ;;  %v630_v24 = vadd.f32 %v834_v19, %v563_v20 }
 0x1dc   : > { %v835_v23 = vpop.f32.mrb[2].mxu1  ;;  %v622_v27 = vadd.f32 %v621_v21, %v553_v17 }
 0x1dd   : > { %v633_v25 = vadd.f32 %v835_v23, %v568_v22  ;;  %v624_v26 = vpop.f32.mrb[3].mxu1 }
 0x1de   : > { %v625_v28 = vadd.f32 %v624_v26, %v558_v18 }
 0x1df   : > { %v797_v29 = vpack.c.bf16 %v633_v25, %v630_v24 }
 0x1e0   : > { %v792_v30 = vpack.c.bf16 %v625_v28, %v622_v27 }
 0x1e1   : > { %799 = vst [vmem:[%s302_s9 + $0x8] sm:$0xff] %v797_v29  }
 0x1e2   : > { %793 = vst [vmem:[%s302_s9] sm:$0xff] %v792_v30  }
 0x1e3 PF: > { %s16_s23 = sadd.s32 1, %s893_s23   ;;  %s1052_s21 = smov %s889_s22 }
 0x1e4   : > { %p13_p5 = scmp.ge.s32.totalorder %s16_s23, 4   ;;  %s1053_s22 = smov %s1055_s24 }
 0x1e6   :  { %15 = sbr.rel (!%p13_p5) target bundleno = 2 (0x2), region = 77 }

// kernel: net_wrapper_forward.2
= control target key start
LH: loop header
LB: loop body
LE: loop exit
PB: predicated region body
PF: predicated region fallthrough
CT: control target
= control target key end

     0   :  { %s2750_s0 = inlined_call_operand.vmem [shape: s32[2], index: 0, kind: input, shape index: {}]   ;;  %s2751_s1 = inlined_call_operand.vmem [shape: bf16[2,16,32], index: 1, kind: input, shape index: {}]   ;;  %s2752_s2 = inlined_call_operand.vmem [shape: bf16[32,64], index: 2, kind: input, shape index: {}]   ;;  %s2753_s3 = inlined_call_operand.vmem [shape: f32[1,64], index: 3, kind: input, shape index: {}]   ;;  %s2754_s4 = inlined_call_operand.vmem [shape: f32[1,64], index: 4, kind: input, shape index: {}]   ;;  %s2755_s5 = inlined_call_operand.vmem [shape: f32[1,64], index: 5, kind: input, shape index: {}]   ;;  %s2756_s6 = inlined_call_operand.vmem [shape: bf16[64,32], index: 6, kind: input, shape index: {}]   ;;  %s2757_s7 = inlined_call_operand.vmem [shape: f32[1,32], index: 7, kind: input, shape index: {}]   ;;  %s2758_s8 = inlined_call_operand.vmem [shape: bf16[32,32], index: 8, kind: input, shape index: {}]   ;;  %s2759_s9 = inlined_call_operand.vmem [shape: bf16[32,32], index: 9, kind: input, shape index: {}]   ;;  %s2760_s10 = inlined_call_operand.vmem [shape: bf16[32,32], index: 10, kind: input, shape index: {}]   ;;  %s2761_s11 = inlined_call_operand.vmem [shape: f32[1,32], index: 11, kind: input, shape index: {}]   ;;  %s2762_s12 = inlined_call_operand.vmem [shape: f32[1,32], index: 12, kind: input, shape index: {}]   ;;  %s2763_s13 = inlined_call_operand.vmem [shape: f32[1,32], index: 13, kind: input, shape index: {}]   ;;  %s2764_s14 = inlined_call_operand.vmem [shape: bf16[32,32], index: 14, kind: input, shape index: {}]   ;;  %s2765_s15 = inlined_call_operand.vmem [shape: f32[1,32], index: 15, kind: input, shape index: {}]   ;;  %s2766_s16 = inlined_call_operand.vmem [shape: f32[1,64], index: 16, kind: input, shape index: {}]   ;;  %s2767_s17 = inlined_call_operand.vmem [shape: f32[1,64], index: 17, kind: input, shape index: {}]   ;;  %s2768_s18 = inlined_call_operand.vmem [shape: bf16[64,64], index: 18, kind: input, shape index: {}]   ;;  %s2769_s19 = inlined_call_operand.vmem [shape: f32[1,64], index: 19, kind: input, shape index: {}]   ;;  %s2770_s20 = inlined_call_operand.vmem [shape: f32[1,64], index: 20, kind: input, shape index: {}]   ;;  %s2771_s21 = inlined_call_operand.vmem [shape: f32[1,64], index: 21, kind: input, shape index: {}]   ;;  %s2772_s22 = inlined_call_operand.vmem [shape: bf16[64,128], index: 22, kind: input, shape index: {}]   ;;  %s2773_s23 = inlined_call_operand.vmem [shape: f32[1,128], index: 23, kind: input, shape index: {}]   ;;  %s2774_s24 = inlined_call_operand.vmem [shape: f32[2,1,64], index: 24, kind: output, shape index: {0}]   ;;  %s2775_s25 = inlined_call_operand.hbm [shape: f32[2,1,128], index: 25, kind: output, shape index: {1}]  }
   0x1   :  { %2792 = sst [smem:[#allocation15_spill]] %s2750_s0 }
   0x2   :  { %2793 = sst [smem:[#allocation16_spill]] %s2751_s1 }
   0x3   :  { %2794 = sst [smem:[#allocation17_spill]] %s2752_s2 }
   0x4   :  { %2795 = sst [smem:[#allocation18_spill]] %s2753_s3 }
   0x5   :  { %2796 = sst [smem:[#allocation19_spill]] %s2754_s4 }
   0x6   :  { %2797 = sst [smem:[#allocation20_spill]] %s2755_s5 }
   0x7   :  { %2798 = sst [smem:[#allocation21_spill]] %s2756_s6  ;;  %s2804_s6 = sld [smem:[#allocation15_spill]] }
   0x8   :  { %2799 = sst [smem:[#allocation22_spill]] %s2757_s7 }
   0x9   :  { %2800 = sst [smem:[#allocation23_spill]] %s2758_s8 }
   0xa   :  { %2801 = sst [smem:[#allocation24_spill]] %s2759_s9 }
   0xb   :  { %2802 = sst [smem:[#allocation25_spill]] %s2769_s19 }
   0xc   :  { %2803 = sst [smem:[#allocation26_spill]] %s2775_s25 }
   0xd   :  { %s31_s19 = sshll.u32 %s2804_s6, 4  ;;  %s32_s19 = int_to_ptr.vmem [resolvable:$true] %s31_s19 }
   0xe   :  { %s2154_s30 = scalar_lea.vmem %s32_s19, 16  ;;  %p2159_p1 = scmp.lt.s32.totalorder %s32_s19, %s32_s19 }
   0xf   :  { %p2155_p0 = scmp.ne.s32.totalorder %s32_s19, %s2154_s30  ;;  %p2160_p2 = scmp.lt.s32.totalorder %s2154_s30, %s2154_s30 }
  0x11   :  { %p2161_p3 = por %p2160_p2, %p2159_p1 }
  0x13   :  { %p2162_p4 = pnand %p2161_p3, %p2155_p0 }
  0x15   :  { %2165 = shalt.err (!%p2162_p4)  }
  0x16   :  { %s2232_s7 = smov [#allocation3]  }
  0x17   :  { %34 = dma.vmem_to_smem %s32_s19, 16, %s2232_s7, [#allocation2] }
  0x18   :  { %2210 = dma.done.wait [#allocation2], 16 }
  0x19   :  { %2211 = vsyncadd [#allocation2], 4294967280 }
  0x1a   :  { %36 = sfence }
  0x1b   :  { %37 = vsyncpa [#allocation5], 0 }
  0x1c   :  { %39 = vsyncpa [#allocation5 + $0x1], 0  ;;  %s2373_s3 = smov 0   ;;  %s2375_s26 = smov 0  }
  0x1d   :  { %s2377_s1 = smov 0   ;;  %s2379_s8 = smov 0  }
  0x1e LB: > { %2805 = sst [smem:[#allocation8_spill]] %s2218_s3  ;;  %s2394_s19 = sadd.s32 4294967295, %s2230_s8   ;;  %s2230_s8 = sphi %s2379_s8, %s2830_s8   ;;  %s2226_s1 = sphi %s2377_s1, %s2832_s1   ;;  %s2222_s26 = sphi %s2375_s26, %s2834_s26   ;;  %s2218_s3 = sphi %s2373_s3, %s2833_s3  }
  0x1f   : > { %2806 = sst [smem:[#allocation9_spill]] %s2226_s1  ;;  %s1845_s27 = sadd.s32 4294967294, %s2230_s8  }
  0x20   : > { %2807 = sst [smem:[#allocation10_spill]] %s2230_s8  ;;  %s2398_s4 = sadd.s32 1, %s2230_s8  }
  0x21   : > { %2808 = sst [smem:[#allocation11_spill]] %s2398_s4  ;;  %s566_s28 = sadd.s32 1, %s2226_s1 }
  0x22   : > { %s563_s9 = ssub.s32 %s2230_s8, %s2398_s4  ;;  %p576_p5 = scmp.ne.s32.totalorder %s2226_s1, %s2222_s26 }
  0x23   : > { %p564_p6 = scmp.eq.s32.totalorder %s563_s9, 0  ;;  %p577_p7 = scmp.eq.s32.totalorder %s2394_s19, 1 }
  0x24   : > { %p582_p8 = scmp.ne.s32.totalorder %s2222_s26, %s2218_s3  ;;  %p583_p9 = scmp.eq.s32.totalorder %s1845_s27, 1 }
  0x25   : > { %s2409_s5 = scalar_select %p564_p6, %s2226_s1, %s566_s28  }
  0x26   : > { %p2411_p10 = por %p577_p7, %p576_p5  ;;  %p2415_p11 = por %p583_p9, %p582_p8 }
  0x27   : > { %2809 = sst [smem:[#allocation12_spill]] %s2409_s5  ;;  %p1848_p12 = scmp.ge.s32.totalorder %s2230_s8, 1 }
  0x28   : > { %s2810_s0 = scalar_select %p2411_p10, 1, 0 }
  0x29   : > { %s2812_s29 = scalar_select %p2415_p11, 1, 0 }
  0x2a   : > { %2811 = sst [smem:[#allocation13_spill]] %s2810_s0  ;;  %p675_p13 = scmp.lt.s32.totalorder %s2230_s8, 3 }
  0x2b   : > { %2813 = sst [smem:[#allocation14_spill]] %s2812_s29 }
  0x2c   : > { %p676_p0 = pnand %p1848_p12, %p675_p13 }
  0x2d   : > { %s2814_s30 = sld [smem:[#allocation17_spill]] (!%p676_p0)  ;;  %v2233_v1 = vmov (!%p676_p0), 0.0   ;;  %vm2234_vm0 = vmmov (!%p676_p0), 0   ;;  %p743_p1 = scmp.lt.s32.totalorder (!%p676_p0), %s2394_s19, 1  ;;  %vm801_vm1 = vcmask (!%p676_p0), 261120   ;;  %v757_v4 = vlaneseq (!%p676_p0) }
  0x2e   : > { %679 = sbr.rel (%p676_p0) target bundleno = 2618 (0xa3a), region = 112  ;;  %1943 = vmatprep.subr.bf16.mxu0 (!%p676_p0), %v2233_v1  ;;  %1951 = vmatprep.subr.bf16.mxu1 (!%p676_p0), %v2233_v1  ;;  %s2815_s7 = sld [smem:[#allocation16_spill]] (!%p676_p0)  ;;  %vm849_vm5 = vcmask (!%p676_p0), 523264   ;;  %vm1006_vm6 = vcmask (!%p676_p0), 130048   ;;  %vm1655_vm11 = vcmask (!%p676_p0), 516096  }
  0x2f   : > { %1947 = vmatprep.mubr.msk.bf16.mxu0 (!%p676_p0), %vm2234_vm0, %v2233_v1  ;;  %1959 = vmatprep.mubr.msk.bf16.mxu1 (!%p676_p0), %vm2234_vm0, %v2233_v1  ;;  %v2449_v5 = vand.u32 (!%p676_p0), 127, %v757_v4  ;;  %v2456_v7 = vshrl.u32 (!%p676_p0), %v757_v4, 7  ;;  %s2816_s6 = sld [smem:[#allocation18_spill]] (!%p676_p0)  ;;  %s2785_s1 = smov (!%p676_p0), 1.0  }
  0x30   : > { %s2236_s8 = smov (!%p676_p0), 0.0  }
  0x31   : > { %v2459_v8 = vadd.s32 (!%p676_p0), 8, %v2456_v7 }
  0x33   : > { %v2107_v0 = vld [vmem:[%s2814_s30] sm:$0xff] (!%p676_p0)   ;;  %v2108_v2 = vld [vmem:[%s2814_s30 + $0x8] sm:$0xff] (!%p676_p0)   ;;  %s2447_s30 = sld [smem:[#allocation3 + %s2394_s19]] (!%p676_p0) }
  0x34   : > { %1944 = vmatpush3.bf16.msra.mxu0 (!%p676_p0), %v2107_v0 }
  0x35   : > { %1945 = vmatprep.subr.bf16.mxu0 %v2233_v1  ;;  %s2436_s28 = scalar_select %p743_p1, %s2394_s19, 1  ;;  %v1854_v9 = vld [vmem:[%s2816_s6] ss:$0 sm:$0xff] }
  0x37   : > { %s1902_s9 = sshll.u32 %s2436_s28, 3 }
  0x38   : > { %1946 = vmatpush3.bf16.msra.mxu0 %v2108_v2  ;;  %s747_s27 = scalar_lea.vmem %s2815_s7, %s1902_s9  ;;  %s2817_s9 = sld [smem:[#allocation21_spill]] }
  0x39   : > { %1963 = vmatprep.subr.bf16.mxu0 %v2233_v1  ;;  %v2109_v3 = vld [vmem:[%s747_s27] sm:$0xff]   ;;  %v2452_v6 = vstv %s2447_s30  ;;  %s753_s5 = scvt.s32.f32 %s2447_s30 }
  0x3a   : > { %vm769_vm2 = vcmp.lt.s32.totalorder %v2449_v5, %v2452_v6  ;;  %vm761_vm3 = vcmp.lt.s32.totalorder %v2456_v7, %v2452_v6  ;;  %vm762_vm4 = vcmp.lt.s32.totalorder %v2459_v8, %v2452_v6 }
  0x3b   : > { %1948 = vmatmul.mubr.msk.bf16.vlgmr.msra.gmra.mrb[0].mxu0 %vm801_vm1, %v2109_v3  ;;  %v2472_v11 = vsel %vm761_vm3, 1.0, %v2233_v1  ;;  %v2480_v15 = vsel %vm762_vm4, 1.0, %v2233_v1  ;;  %s2504_s4 = smax.f32 %s2785_s1, %s753_s5 }
  0x3c   : > { %1965 = vmatprep.mubr.msk.bf16.mxu0 %vm2234_vm0, %v2233_v1  ;;  %s848_s29 = smul.f32 64.0, %s2504_s4 }
  0x3e   : > { %v2110_v28 = vld [vmem:[%s2817_s9] sm:$0xff]   ;;  %v2111_v29 = vld [vmem:[%s2817_s9 + $0x8] sm:$0xff]   ;;  %v862_v30 = vstv %s848_s29  ;;  %v2112_v41 = vld [vmem:[%s2817_s9 + $0x10] sm:$0xff]   ;;  %s2822_s29 = sld [smem:[#allocation23_spill]] }
  0x3f   : > { %1952 = vmatpush3.bf16.msra.mxu1 %v2110_v28  ;;  %2130 = vrcp.f32 %v862_v30  ;;  %v2113_v46 = vld [vmem:[%s2817_s9 + $0x18] sm:$0xff]   ;;  %s2818_s9 = sld [smem:[#allocation19_spill]]  ;;  %v1050_v28 = vstv %s2504_s4 }
  0x40   : > { %1953 = vmatprep.subr.bf16.mxu1 %v2233_v1 }
  0x43   : > { %1954 = vmatpush3.bf16.msra.mxu1 %v2111_v29 }
  0x44   : > { %1955 = vmatprep.subr.bf16.mxu1 %v2233_v1  ;;  %v2114_v5 = vld [vmem:[%s2822_s29] sm:$0xff]  }
  0x45   : > { %v1859_v53 = vld [vmem:[%s2818_s9] ss:$0 sm:$0xff]  ;;  %s2820_s9 = sld [smem:[#allocation24_spill]] }
  0x47   : > { %1956 = vmatpush3.bf16.msra.mxu1 %v2112_v41 }
  0x48   : > { %1957 = vmatprep.subr.bf16.mxu1 %v2233_v1 }
  0x49   : > { %v2131_v42 = vpop.eup %2130 }
  0x4b   : > { %1958 = vmatpush3.bf16.msra.mxu1 %v2113_v46  ;;  %v2116_v2 = vld [vmem:[%s2820_s9] sm:$0xff]  }
  0x4c   : > { %1975 = vmatprep.subr.bf16.mxu1 %v2233_v1 }
 0x10e   : > { %v839_v10 = vpop.f32.mrb[0].mxu0 }
 0x10f   : > { %v2474_v12 = vadd.f32 %v1854_v9, %v839_v10  ;;  %v1949_v13 = vpop.f32.mrb[1].mxu0 }
 0x110   : > { %v842_v14 = vpop.f32.mrb[2].mxu0 }
 0x111   : > { %v2482_v16 = vadd.f32 %v1854_v9, %v842_v14  ;;  %v1950_v17 = vpop.f32.mrb[3].mxu0  ;;  %v846_v18 = vmul.f32 %v2472_v11, %v2474_v12 }
 0x113   : > { %v847_v19 = vmul.f32 %v2480_v15, %v2482_v16  ;;  %v850_v20 = vsel %vm849_vm5, %v846_v18, 0.0  ;;  %v866_v22 = vmul.f32 %v846_v18, %v2474_v12 }
 0x115   : > { %v851_v21 = vsel %vm849_vm5, %v847_v19, 0.0  ;;  %v867_v23 = vmul.f32 %v847_v19, %v2482_v16  ;;  %v868_v26 = vsel %vm849_vm5, %v866_v22, 0.0 }
 0x116   : > { %v852_v24 = vadd.f32 %v851_v21, %v850_v20  ;;  %v1853_v20 = vsel %vm769_vm2, 1.0, %v2233_v1 }
 0x117   : > { %v869_v25 = vsel %vm849_vm5, %v867_v23, 0.0 }
 0x118   : > { %853 = vadd.xlane.f32.xlu0 %v852_v24  ;;  %v870_v27 = vadd.f32 %v869_v25, %v868_v26  ;;  %v2549_v24 = vpack.c.bf16 %v1853_v20, %v1853_v20  ;;  %v2115_v26 = vld [vmem:[%s2822_s29 + $0x8] sm:$0xff]  }
 0x11c   : > { %871 = vadd.xlane.f32.xlu0 %v870_v27  ;;  %v2117_v27 = vld [vmem:[%s2820_s9 + $0x8] sm:$0xff]  }
 0x1a5   : > { %v854_v31 = vpop.xlane.xlu0 %853 }
 0x1a6   : > { %v855_v32 = vrot.slane %v854_v31, 4 }
 0x1a8   : > { %v856_v33 = vadd.f32 %v855_v32, %v854_v31 }
 0x1a9   : > { %v872_v34 = vpop.xlane.xlu0 %871 }
 0x1aa   : > { %v857_v35 = vrot.slane %v856_v33, 2  ;;  %v873_v36 = vrot.slane %v872_v34, 4 }
 0x1ac   : > { %v874_v37 = vadd.f32 %v873_v36, %v872_v34  ;;  %v858_v38 = vadd.f32 %v857_v35, %v856_v33  ;;  %v2118_v35 = vld [vmem:[%s2760_s10] sm:$0xff]  }
 0x1ae   : > { %v875_v39 = vrot.slane %v874_v37, 2  ;;  %v859_v40 = vrot.slane %v858_v38, 1 }
 0x1b0   : > { %v876_v43 = vadd.f32 %v875_v39, %v874_v37  ;;  %v860_v44 = vadd.f32 %v859_v40, %v858_v38  ;;  %v2119_v39 = vld [vmem:[%s2760_s10 + $0x8] sm:$0xff]  }
 0x1b2   : > { %2049 = vpush %v860_v44  ;;  %v877_v45 = vrot.slane %v876_v43, 1 }
 0x1b3   : > { %2051 = vpush %v2131_v42 }
 0x1b4   : > { %v878_v47 = vadd.f32 %v877_v45, %v876_v43 }
 0x1b6   : > { %2053 = vpush %v878_v47 }
 0x1e3   : > { %s2050_s27 = spop %2049 }
 0x1e4   : > { %s2052_s2 = spop %2051 }
 0x1e5   : > { %s865_s6 = smul.f32 %s2052_s2, %s2050_s27 }
 0x1e7   : > { %s884_s7 = smul.f32 %s865_s6, %s865_s6  ;;  %s2054_s30 = spop %2053  ;;  %v888_v50 = vstv %s865_s6 }
 0x1e8   : > { %s883_s1 = smul.f32 %s2054_s30, %s2052_s2  ;;  %v889_v51 = vsub.f32 %v2474_v12, %v888_v50  ;;  %v890_v52 = vsub.f32 %v2482_v16, %v888_v50  ;;  %s2237_s6 = smov 32  }
 0x1ea   : > { %s885_s3 = ssub.f32 %s883_s1, %s884_s7  ;;  %v897_v54 = vmul.f32 %v1859_v53, %v889_v51  ;;  %v898_v55 = vmul.f32 %v1859_v53, %v890_v52  ;;  %s2821_s7 = sld [smem:[#allocation22_spill]] }
 0x1eb   : > { %s1899_s1 = sshll.u32 %s2394_s19, 4 }
 0x1ec   : > { %s886_s25 = smax.f32 %s2236_s8, %s885_s3  ;;  %s1869_s8 = sadd.f32 -1.0, %s2504_s4 }
 0x1ed   : > { %s899_s0 = sadd.f32 1e-05, %s886_s25  ;;  %s2819_s25 = sld [smem:[#allocation20_spill]] }
 0x1ee   : > { %s2824_s3 = sld [smem:[#allocation25_spill]]  ;;  %s750_s4 = scalar_lea.vmem %s2774_s24, %s2436_s28 }
 0x1ef   : > { %v900_v48 = vstv %s899_s0  ;;  %s2823_s0 = smov 1.0  }
 0x1f0   : > { %2132 = vrsqrt.f32 %v900_v48  ;;  %v1861_v3 = vld [vmem:[%s2821_s7] ss:$0 sm:$0xff]  ;;  %s1100_s2 = smax.f32 %s2823_s0, %s1869_s8 }
 0x1f1   : > { %2134 = vrcp.f32 %v1050_v28  ;;  %v1101_v29 = vstv %s1100_s2  ;;  %s2238_s2 = smov 1e-24  }
 0x1f2   : > { %2136 = vrcp.f32 %v1101_v29 }
 0x1f3   : > { %v1860_v57 = vld [vmem:[%s2819_s25] ss:$0 sm:$0xff] }
 0x1fa   : > { %v2133_v49 = vpop.eup %2132 }
 0x1fb   : > { %2055 = vpush %v2133_v49  ;;  %v2135_v30 = vpop.eup %2134 }
 0x1fc   : > { %v2137_v41 = vpop.eup %2136 }
 0x22c   : > { %s2056_s27 = spop %2055 }
 0x22d   : > { %v903_v56 = vstv %s2056_s27 }
 0x22e   : > { %v904_v58 = vmul.f32 %v903_v56, %v897_v54  ;;  %v905_v59 = vmul.f32 %v903_v56, %v898_v55 }
 0x230   : > { %v913_v60 = vadd.f32 %v1860_v57, %v904_v58  ;;  %v914_v61 = vadd.f32 %v1860_v57, %v905_v59  ;;  %v2120_v59 = vld [vmem:[%s2764_s14] sm:$0xff]  }
 0x232   : > { %v915_v62 = vmul.f32 %v2472_v11, %v913_v60  ;;  %v916_v63 = vmul.f32 %v2480_v15, %v914_v61  ;;  %v2121_v60 = vld [vmem:[%s2764_s14 + $0x8] sm:$0xff]   ;;  %v1178_v61 = vsub.s32 0, %v2456_v7 }
 0x234   : > { %v917_v0 = vpack.c.bf16 %v916_v63, %v915_v62 }
 0x236   : > { %1960 = vmatmul.mubr.msk.bf16.vlgmr.msra.gmra.mrb[0].mxu1 %vm849_vm5, %v917_v0 }
 0x237   : > { %1979 = vmatprep.mubr.msk.bf16.mxu1 %vm2234_vm0, %v2233_v1  ;;  %1976 = vmatpush3.bf16.msra.mxu1 %v2116_v2 }
 0x238   : > { %1977 = vmatprep.subr.bf16.mxu1 %v2233_v1 }
 0x23b   : > { %1978 = vmatpush3.bf16.msra.mxu1 %v2117_v27  ;;  %v1881_v27 = vld [vmem:[%s2763_s13] ss:$0 sm:$0xff] }
 0x23c   : > { %1991 = vmatprep.subr.bf16.mxu1 %v2233_v1 }
 0x309   : > { %v994_v4 = vpop.f32.mrb[0].mxu1 }
 0x30a   : > { %v995_v9 = vadd.f32 %v1861_v3, %v994_v4  ;;  %v1961_v10 = vpop.f32.mrb[1].mxu1 }
 0x30b   : > { %v997_v12 = vpop.f32.mrb[2].mxu1 }
 0x30c   : > { %v1001_v13 = vmax.f32 %v995_v9, 0.0  ;;  %v998_v14 = vadd.f32 %v1861_v3, %v997_v12  ;;  %v1962_v16 = vpop.f32.mrb[3].mxu1 }
 0x30e   : > { %v2536_v17 = vmul.f32 %v2472_v11, %v1001_v13  ;;  %v1002_v18 = vmax.f32 %v998_v14, 0.0  ;;  %v1879_v14 = vld [vmem:[%s2761_s11] ss:$0 sm:$0xff] }
 0x310   : > { %v2539_v19 = vmul.f32 %v2480_v15, %v1002_v18  ;;  %v1053_v21 = vmul.f32 %v2536_v17, %v1001_v13  ;;  %v1509_v8 = vmul.f32 %v2536_v17, %v2536_v17 }
 0x312   : > { %v1054_v22 = vmul.f32 %v2539_v19, %v1002_v18  ;;  %v1005_v23 = vpack.c.bf16 %v2539_v19, %v2536_v17 }
 0x314   : > { %v1055_v25 = vpack.c.bf16 %v1054_v22, %v1053_v21  ;;  %1964 = vmatpush3.bf16.msra.mxu0 %v1005_v23 }
 0x315   : > { %1969 = vmatprep.subr.bf16.mxu0 %v2233_v1 }
 0x317   : > { %1966 = vmatmul.mubr.msk.bf16.vlgmr.msra.gmra.mrb[4].mxu0 %vm1006_vm6, %v2549_v24 }
 0x318   : > { %1970 = vmatpush3.bf16.msra.mxu0 %v1055_v25  ;;  %1971 = vmatprep.mubr.msk.bf16.mxu0 %vm2234_vm0, %v2233_v1  ;;  %v1880_v25 = vld [vmem:[%s2762_s12] ss:$0 sm:$0xff] }
 0x319   : > { %1983 = vmatprep.subr.bf16.mxu0 %v2233_v1 }
 0x31f   : > { %1972 = vmatmul.mubr.msk.bf16.vlgmr.msra.gmra.mrb[8].mxu0 %vm1006_vm6, %v2549_v24 }
 0x320   : > { %1984 = vmatpush3.bf16.msra.mxu0 %v2114_v5  ;;  %1987 = vmatprep.mubr.msk.bf16.mxu0 %vm2234_vm0, %v2233_v1 }
 0x321   : > { %1985 = vmatprep.subr.bf16.mxu0 %v2233_v1 }
 0x324   : > { %1986 = vmatpush3.bf16.msra.mxu0 %v2115_v26 }
 0x325   : > { %1999 = vmatprep.subr.bf16.mxu0 %v2233_v1 }
 0x327   : > { %1988 = vmatmul.mubr.msk.bf16.vlgmr.msra.gmra.mrb[12].mxu0 %vm801_vm1, %v1005_v23 }
 0x328   : > { %2003 = vmatprep.mubr.msk.bf16.mxu0 %vm2234_vm0, %v2233_v1  ;;  %2000 = vmatpush3.bf16.msra.mxu0 %v2120_v59 }
 0x329   : > { %2001 = vmatprep.subr.bf16.mxu0 %v2233_v1 }
 0x32c   : > { %2002 = vmatpush3.bf16.msra.mxu0 %v2121_v60 }
 0x32d   : > { %2013 = vmatprep.subr.bf16.mxu0 %v2233_v1 }
 0x3ea   : > { %v1044_v31 = vpop.f32.mrb[4].mxu0 }
 0x3eb   : > { %v1052_v32 = vmul.f32 %v2135_v30, %v1044_v31  ;;  %v1967_v33 = vpop.f32.mrb[5].mxu0 }
 0x3ec   : > { %v1047_v34 = vpop.f32.mrb[6].mxu0 }
 0x3ed   : > { %v1116_v36 = vpack.c.bf16 %v1052_v32, %v1052_v32  ;;  %v1968_v37 = vpop.f32.mrb[7].mxu0  ;;  %v1096_v38 = vmul.f32 %v1052_v32, %v1050_v28 }
 0x3ef   : > { %1980 = vmatmul.mubr.msk.bf16.vlgmr.msra.gmra.mrb[4].mxu1 %vm801_vm1, %v1116_v36  ;;  %v1097_v40 = vmul.f32 %v1096_v38, %v1052_v32 }
 0x3f0   : > { %1992 = vmatpush3.bf16.msra.mxu1 %v2118_v35  ;;  %1995 = vmatprep.mubr.msk.bf16.mxu1 %vm2234_vm0, %v2233_v1  ;;  %v1882_v35 = vld [vmem:[%s2765_s15] ss:$0 sm:$0xff] }
 0x3f1   : > { %1993 = vmatprep.subr.bf16.mxu1 %v2233_v1 }
 0x3f2   : > { %v1090_v42 = vpop.f32.mrb[8].mxu0 }
 0x3f3   : > { %v1098_v43 = vsub.f32 %v1090_v42, %v1097_v40  ;;  %v1973_v44 = vpop.f32.mrb[9].mxu0 }
 0x3f4   : > { %v1093_v45 = vpop.f32.mrb[10].mxu0  ;;  %1994 = vmatpush3.bf16.msra.mxu1 %v2119_v39 }
 0x3f5   : > { %v1103_v46 = vmul.f32 %v2137_v41, %v1098_v43  ;;  %v1974_v47 = vpop.f32.mrb[11].mxu0  ;;  %2007 = vmatprep.subr.bf16.mxu1 %v2233_v1 }
 0x3f7   : > { %v1104_v48 = vmax.f32 %v1103_v46, 0.0001 }
 0x3f9   : > { %2138 = vrsqrt.f32 %v1104_v48  ;;  %vm1107_vm7 = vcmp.eq.f32.partialorder %v1104_v48, inf  ;;  %v1110_v55 = vand.u32 2147483648, %v1104_v48  ;;  %vm1109_vm8 = vcmp.eq.f32.partialorder %v1104_v48, 0.0 }
 0x3fa   : > { %v1229_v49 = vpop.f32.mrb[12].mxu0 }
 0x3fb   : > { %v1989_v50 = vpop.f32.mrb[13].mxu0 }
 0x3fc   : > { %v1232_v51 = vpop.f32.mrb[14].mxu0 }
 0x3fd   : > { %v1990_v52 = vpop.f32.mrb[15].mxu0 }
 0x403   : > { %v2139_v53 = vpop.eup %2138 }
 0x404   : > { %v1106_v54 = vmul.f32 %v2139_v53, %v1104_v48 }
 0x406   : > { %v1108_v56 = vsel %vm1107_vm7, %v1104_v48, %v1106_v54 }
 0x407   : > { %v1111_v57 = vsel %vm1109_vm8, %v1110_v55, %v1108_v56 }
 0x408   : > { %v1236_v58 = vpack.c.bf16 %v1111_v57, %v1111_v57 }
 0x40a   : > { %1996 = vmatmul.mubr.msk.bf16.vlgmr.msra.gmra.mrb[8].mxu1 %vm801_vm1, %v1236_v58  ;;  %v1510_v58 = vmul.f32 %v2539_v19, %v2539_v19 }
 0x40b   : > { %2009 = vmatprep.mubr.msk.bf16.mxu1 %vm2234_vm0, %v2233_v1 }
 0x4c2   : > { %v1170_v62 = vpop.f32.mrb[4].mxu1 }
 0x4c3   : > { %v1179_v63 = vrot.slane %v1170_v62, %v1178_v61  ;;  %v1981_v0 = vpop.f32.mrb[5].mxu1 }
 0x4c4   : > { %v1173_v2 = vpop.f32.mrb[6].mxu1 }
 0x4c5   : > { %v1230_v3 = vadd.f32 %v1229_v49, %v1179_v63  ;;  %v1233_v4 = vadd.f32 %v1232_v51, %v1179_v63  ;;  %v1982_v9 = vpop.f32.mrb[7].mxu1 }
 0x4dd   : > { %v1290_v10 = vpop.f32.mrb[8].mxu1 }
 0x4de   : > { %v1299_v12 = vrot.slane %v1290_v10, %v1178_v61  ;;  %v1997_v13 = vpop.f32.mrb[9].mxu1 }
 0x4df   : > { %v1293_v16 = vpop.f32.mrb[10].mxu1 }
 0x4e0   : > { %v1300_v18 = vadd.f32 %v1299_v12, %v1230_v3  ;;  %v1301_v20 = vadd.f32 %v1299_v12, %v1233_v4  ;;  %v1998_v21 = vpop.f32.mrb[11].mxu1 }
 0x4e2   : > { %v1309_v22 = vadd.f32 %v1879_v14, %v1300_v18  ;;  %v1310_v23 = vadd.f32 %v1879_v14, %v1301_v20 }
 0x4e4   : > { %v1311_v5 = vmax.f32 %v1309_v22, 0.0  ;;  %v1312_v26 = vmax.f32 %v1310_v23, 0.0 }
 0x4e6   : > { %v1320_v28 = vmul.f32 %v1880_v25, %v1311_v5  ;;  %v1321_v29 = vmul.f32 %v1880_v25, %v1312_v26 }
 0x4e8   : > { %v1329_v30 = vadd.f32 %v1881_v27, %v1320_v28  ;;  %v1330_v31 = vadd.f32 %v1881_v27, %v1321_v29  ;;  %v2124_v28 = vld [vmem:[%s2768_s18 + $0x10] sm:$0xff]   ;;  %v2125_v29 = vld [vmem:[%s2768_s18 + $0x18] sm:$0xff]  }
 0x4ea   : > { %2140 = vtanh.f32 %v1329_v30 }
 0x4eb   : > { %2142 = vtanh.f32 %v1330_v31 }
 0x4f4   : > { %v2141_v32 = vpop.eup %2140 }
 0x4f5   : > { %v2143_v33 = vpop.eup %2142 }
 0x4f6   : > { %v1333_v34 = vpack.c.bf16 %v2143_v33, %v2141_v32 }
 0x4f8   : > { %2004 = vmatmul.mubr.msk.bf16.vlgmr.msra.gmra.mrb[16].mxu0 %vm801_vm1, %v1333_v34 }
 0x4f9   : > { %2015 = vmatprep.mubr.msk.bf16.mxu0 %vm2234_vm0, %v2233_v1 }
 0x5cb   : > { %v1394_v36 = vpop.f32.mrb[16].mxu0 }
 0x5cc   : > { %v1395_v37 = vadd.f32 %v1882_v35, %v1394_v36  ;;  %v2005_v38 = vpop.f32.mrb[17].mxu0 }
 0x5cd   : > { %v1397_v39 = vpop.f32.mrb[18].mxu0 }
 0x5ce   : > { %v1403_v40 = vsel %vm761_vm3, %v1395_v37, -1e+30  ;;  %v1398_v41 = vadd.f32 %v1882_v35, %v1397_v39  ;;  %v2006_v42 = vpop.f32.mrb[19].mxu0  ;;  %v1570_v35 = vld [vmem:[%s2766_s16] sm:$0x1] }
 0x5cf   : > { %v1405_v44 = vsel %vm801_vm1, %v1403_v40, -inf  ;;  %v1572_v37 = vld [vmem:[%s2767_s17] sm:$0x1] }
 0x5d0   : > { %v1404_v43 = vsel %vm762_vm4, %v1398_v41, -1e+30  ;;  %v1583_v42 = vld [vmem:[%s2824_s3] sm:$0x1] }
 0x5d1   : > { %v1406_v45 = vsel %vm801_vm1, %v1404_v43, -inf }
 0x5d2   : > { %v1407_v46 = vmax.f32 %v1405_v44, %v1406_v45  ;;  %v1651_v44 = vld [vmem:[%s2770_s20] sm:$0x1] }
 0x5d4   : > { %v1408_v47 = vrot.slane %v1407_v46, 4 }
 0x5d6   : > { %v1409_v48 = vmax.f32 %v1407_v46, %v1408_v47  ;;  %v1653_v47 = vld [vmem:[%s2771_s21] sm:$0x1] }
 0x5d8   : > { %v1410_v49 = vrot.slane %v1409_v48, 2 }
 0x5da   : > { %v1411_v50 = vmax.f32 %v1409_v48, %v1410_v49 }
 0x5dc   : > { %v1412_v51 = vrot.slane %v1411_v50, 1 }
 0x5de   : > { %v1413_v52 = vmax.f32 %v1411_v50, %v1412_v51 }
 0x5e0   : > { %v1414_v53 = vsub.f32 %v1403_v40, %v1413_v52  ;;  %v1415_v7 = vsub.f32 %v1404_v43, %v1413_v52 }
 0x5e2   : > { %v1416_v54 = vmul.f32 1.442695, %v1414_v53  ;;  %v1418_v55 = vmul.f32 1.442695, %v1415_v7  ;;  %v2126_v7 = vld [vmem:[%s2772_s22] sm:$0xff]  }
 0x5e4   : > { %2144 = vpow2.f32 %v1416_v54  ;;  %v2127_v54 = vld [vmem:[%s2772_s22 + $0x8] sm:$0xff]  }
 0x5e5   : > { %2146 = vpow2.f32 %v1418_v55  ;;  %v2128_v55 = vld [vmem:[%s2772_s22 + $0x10] sm:$0xff]  }
 0x5ee   : > { %v2145_v56 = vpop.eup %2144 }
 0x5ef   : > { %v2147_v6 = vpop.eup %2146  ;;  %v1420_v57 = vmul.f32 %v2145_v56, %v2472_v11  ;;  %v2122_v11 = vld [vmem:[%s2768_s18] sm:$0xff]   ;;  %v2129_v56 = vld [vmem:[%s2772_s22 + $0x18] sm:$0xff]  }
 0x5f0   : > { %v1421_v59 = vmul.f32 %v2147_v6, %v2480_v15  ;;  %v2123_v15 = vld [vmem:[%s2768_s18 + $0x8] sm:$0xff]  }
 0x5f1   : > { %v1465_v60 = vmul.f32 %v1420_v57, %v2536_v17  ;;  %v1511_v61 = vmul.f32 %v1509_v8, %v1420_v57 }
 0x5f2   : > { %v1422_v62 = vpack.c.bf16 %v1421_v59, %v1420_v57  ;;  %v1466_v63 = vmul.f32 %v1421_v59, %v2539_v19  ;;  %v1512_v0 = vmul.f32 %v1510_v58, %v1421_v59 }
 0x5f4   : > { %2008 = vmatpush3.bf16.msra.mxu1 %v1422_v62  ;;  %v1467_v2 = vpack.c.bf16 %v1466_v63, %v1465_v60  ;;  %v1513_v3 = vpack.c.bf16 %v1512_v0, %v1511_v61 }
 0x5f5   : > { %2019 = vmatprep.subr.bf16.mxu1 %v2233_v1 }
 0x5f6   : > { %2014 = vmatpush3.bf16.msra.mxu0 %v1467_v2 }
 0x5f7   : > { %2010 = vmatmul.mubr.msk.bf16.vlgmr.msra.gmra.mrb[12].mxu1 %vm1006_vm6, %v2549_v24  ;;  %2025 = vmatprep.subr.bf16.mxu0 %v2233_v1 }
 0x5f8   : > { %2020 = vmatpush3.bf16.msra.mxu1 %v1513_v3  ;;  %2021 = vmatprep.mubr.msk.bf16.mxu1 %vm2234_vm0, %v2233_v1  ;;  %v1683_v3 = vld [vmem:[%s2773_s23] sm:$0x1] }
 0x5f9   : > { %2016 = vmatmul.mubr.msk.bf16.vlgmr.msra.gmra.mrb[20].mxu0 %vm1006_vm6, %v2549_v24  ;;  %2037 = vmatprep.subr.bf16.mxu1 %v2233_v1 }
 0x5fa   : > { %2033 = vmatprep.mubr.msk.bf16.mxu0 %vm2234_vm0, %v2233_v1  ;;  %2026 = vmatpush3.bf16.msra.mxu0 %v2122_v11 }
 0x5fb   : > { %2027 = vmatprep.subr.bf16.mxu0 %v2233_v1 }
 0x5fe   : > { %2028 = vmatpush3.bf16.msra.mxu0 %v2123_v15 }
 0x5ff   : > { %2022 = vmatmul.mubr.msk.bf16.vlgmr.msra.gmra.mrb[16].mxu1 %vm1006_vm6, %v2549_v24  ;;  %2029 = vmatprep.subr.bf16.mxu0 %v2233_v1 }
 0x600   : > { %2045 = vmatprep.mubr.msk.bf16.mxu1 %vm2234_vm0, %v2233_v1  ;;  %2038 = vmatpush3.bf16.msra.mxu1 %v2126_v7 }
 0x601   : > { %2039 = vmatprep.subr.bf16.mxu1 %v2233_v1 }
 0x602   : > { %2030 = vmatpush3.bf16.msra.mxu0 %v2124_v28 }
 0x603   : > { %2031 = vmatprep.subr.bf16.mxu0 %v2233_v1 }
 0x604   : > { %2040 = vmatpush3.bf16.msra.mxu1 %v2127_v54 }
 0x605   : > { %2041 = vmatprep.subr.bf16.mxu1 %v2233_v1 }
 0x606   : > { %2032 = vmatpush3.bf16.msra.mxu0 %v2125_v29 }
 0x608   : > { %2042 = vmatpush3.bf16.msra.mxu1 %v2128_v55 }
 0x609   : > { %2043 = vmatprep.subr.bf16.mxu1 %v2233_v1 }
 0x60c   : > { %2044 = vmatpush3.bf16.msra.mxu1 %v2129_v56 }
 0x6ca   : > { %v1457_v17 = vpop.f32.mrb[12].mxu1 }
 0x6cb   : > { %v1463_v19 = vmax.f32 %v1457_v17, 1e-30  ;;  %v2011_v24 = vpop.f32.mrb[13].mxu1 }
 0x6cc   : > { %v1460_v4 = vpop.f32.mrb[14].mxu1  ;;  %v1502_v9 = vpop.f32.mrb[20].mxu0 }
 0x6cd   : > { %2148 = vrcp.f32 %v1463_v19  ;;  %v2012_v10 = vpop.f32.mrb[15].mxu1  ;;  %v2017_v12 = vpop.f32.mrb[21].mxu0 }
 0x6ce   : > { %v1505_v13 = vpop.f32.mrb[22].mxu0 }
 0x6cf   : > { %v2018_v14 = vpop.f32.mrb[23].mxu0 }
 0x6d2   : > { %v1548_v16 = vpop.f32.mrb[16].mxu1 }
 0x6d3   : > { %v2023_v18 = vpop.f32.mrb[17].mxu1 }
 0x6d4   : > { %v1551_v20 = vpop.f32.mrb[18].mxu1 }
 0x6d5   : > { %v2024_v21 = vpop.f32.mrb[19].mxu1 }
 0x6d7   : > { %v2149_v22 = vpop.eup %2148 }
 0x6d8   : > { %v1508_v23 = vmul.f32 %v2149_v22, %v1502_v9  ;;  %v1554_v25 = vmul.f32 %v2149_v22, %v1548_v16 }
 0x6da   : > { %v1555_v5 = vmul.f32 %v1508_v23, %v1508_v23 }
 0x6dc   : > { %v1556_v26 = vsub.f32 %v1554_v25, %v1555_v5 }
 0x6de   : > { %v1557_v27 = vmax.f32 %v1556_v26, 0.0001 }
 0x6e0   : > { %2150 = vrsqrt.f32 %v1557_v27  ;;  %vm1560_vm9 = vcmp.eq.f32.partialorder %v1557_v27, inf  ;;  %v1563_v32 = vand.u32 2147483648, %v1557_v27  ;;  %vm1562_vm10 = vcmp.eq.f32.partialorder %v1557_v27, 0.0 }
 0x6ea   : > { %v2151_v30 = vpop.eup %2150 }
 0x6eb   : > { %v1559_v31 = vmul.f32 %v2151_v30, %v1557_v27 }
 0x6ed   : > { %v1561_v33 = vsel %vm1560_vm9, %v1557_v27, %v1559_v31 }
 0x6ee   : > { %v1564_v34 = vsel %vm1562_vm10, %v1563_v32, %v1561_v33 }
 0x6ef   : > { %1566 = vrot.lane.b32.xlu1 %v1564_v34, %s2237_s6 }
 0x761   : > { %v1567_v36 = vpop.permute.xlu1 %1566 }
 0x762   : > { %v1569_v38 = vsel %vm801_vm1, %v1508_v23, %v1567_v36 }
 0x763   : > { %v1571_v39 = vmul.f32 %v1570_v35, %v1569_v38 }
 0x765   : > { %v1573_v40 = vadd.f32 %v1572_v37, %v1571_v39 }
 0x767   : > { %v1574_v41 = vpack.c.bf16 %v1573_v40, %v1573_v40 }
 0x769   : > { %2034 = vmatmul.mubr.msk.bf16.vlgmr.msra.gmra.mrb[24].mxu0 %vm849_vm5, %v1574_v41 }
 0x83c   : > { %v1645_v43 = vpop.f32.mrb[24].mxu0 }
 0x83d   : > { %v1646_v45 = vadd.f32 %v1645_v43, %v1583_v42  ;;  %v2035_v46 = vpop.f32.mrb[25].mxu0 }
 0x83e   : > { %v1648_v48 = vpop.f32.mrb[26].mxu0 }
 0x83f   : > { %v1652_v49 = vmul.f32 %v1651_v44, %v1646_v45  ;;  %v2036_v50 = vpop.f32.mrb[27].mxu0 }
 0x841   : > { %v1654_v51 = vadd.f32 %v1653_v47, %v1652_v49 }
 0x843   : > { %v1657_v52 = vmul.f32 %v1654_v51, %v1654_v51  ;;  %1656 = vst.msk [vmem:[%s750_s4] sm:$0x1] %vm1655_vm11, %v1654_v51  ;;  %s741_s4 = sand.u32 1, %s2222_s26  }
 0x844   : > { %s742_s3 = scalar_lea.vmem [#allocation4], %s741_s4 }
 0x845   : > { %v1658_v53 = vsel %vm1655_vm11, %v1657_v52, 0.0  ;;  %s1771_s28 = sshll.u32 %s742_s3, 4  ;;  %s2710_s28 = int_to_ptr.vmem [resolvable:$true] %s1771_s28 }
 0x846   : > { %1659 = vadd.xlane.f32.xlu1 %v1658_v53  ;;  %s2166_s19 = scalar_lea.vmem %s2710_s28, 16 }
 0x847   : > { %p2167_p2 = scmp.ne.s32.totalorder %s2710_s28, %s2166_s19 }
 0x849   : > { %p2168_p3 = pnand %p2167_p2, %p2411_p10 }
 0x84b   : > { %p2169_p4 = pneg %p2168_p3 }
 0x8d3   : > { %v1660_v6 = vpop.xlane.xlu1 %1659 }
 0x8d4   : > { %v1661_v8 = vrot.slane %v1660_v6, 4 }
 0x8d6   : > { %v1662_v57 = vadd.f32 %v1661_v8, %v1660_v6 }
 0x8d8   : > { %v1663_v58 = vrot.slane %v1662_v57, 2 }
 0x8da   : > { %v1664_v59 = vadd.f32 %v1663_v58, %v1662_v57 }
 0x8dc   : > { %v1665_v60 = vrot.slane %v1664_v59, 1 }
 0x8de   : > { %v1666_v61 = vadd.f32 %v1665_v60, %v1664_v59 }
 0x8e0   : > { %2057 = vpush %v1666_v61 }
 0x911   : > { %s2058_s0 = spop %2057 }
 0x912   : > { %s1668_s6 = smax.f32 %s2238_s2, %s2058_s0  ;;  %s2826_s0 = sld [smem:[#allocation26_spill]] }
 0x913   : > { %v1669_v62 = vstv %s1668_s6  ;;  %s1756_s6 = scalar_lea.sflag [#allocation5], %s741_s4 }
 0x914   : > { %2152 = vrsqrt.f32 %v1669_v62 }
 0x918   : > { %s2708_s2 = scalar_lea.hbm %s2826_s0, %s1899_s1 }
 0x91e   : > { %v2153_v1 = vpop.eup %2152 }
 0x91f   : > { %2059 = vpush %v2153_v1 }
 0x950   : > { %s2060_s7 = spop %2059 }
 0x951   : > { %v1672_v63 = vstv %s2060_s7  ;;  %s2239_s7 = smov [#allocation4]  }
 0x952   : > { %v1673_v0 = vmul.f32 %v1672_v63, %v1654_v51  ;;  %s2170_s30 = sshll.u32 %s2239_s7, 4  ;;  %s2171_s30 = int_to_ptr.vmem [resolvable:$false] %s2170_s30 }
 0x953   : > { %s2172_s5 = scalar_lea.vmem %s2171_s30, 32  ;;  %p2173_p5 = scmp.lt.s32.totalorder %s2710_s28, %s2171_s30 }
 0x954   : > { %v1674_v2 = vpack.c.bf16 %v1673_v0, %v1673_v0  ;;  %p2174_p6 = scmp.lt.s32.totalorder %s2172_s5, %s2166_s19 }
 0x956   : > { %2046 = vmatmul.mubr.msk.bf16.vlgmr.msra.gmra.mrb[20].mxu1 %vm849_vm5, %v1674_v2  ;;  %p2175_p7 = por %p2174_p6, %p2173_p5 }
 0x958   : > { %p2176_p8 = pnand %p2175_p7, %p2169_p4 }
 0xa29   : > { %v1745_v11 = vpop.f32.mrb[20].mxu1 }
 0xa2a   : > { %v1746_v15 = vadd.f32 %v1745_v11, %v1683_v3  ;;  %v2047_v17 = vpop.f32.mrb[21].mxu1 }
 0xa2b   : > { %v1748_v19 = vpop.f32.mrb[22].mxu1 }
 0xa2c   : > { %1751 = vst [vmem:[%s742_s3] sm:$0x1] %v1746_v15  ;;  %v2048_v24 = vpop.f32.mrb[23].mxu1 }
 0xa2d   : > { %2179 = shalt.err (!%p2176_p8)
}
 0xa2e   : > { %s2180_s4 = scalar_lea.hbm %s2708_s2, 16  ;;  %s2184_s25 = scalar_lea.hbm %s2826_s0, 32 }
 0xa2f   : > { %p2181_p9 = scmp.ne.s32.totalorder %s2708_s2, %s2180_s4  ;;  %p2185_p0 = scmp.lt.u32.totalorder %s2708_s2, %s2826_s0 }
 0xa30   : > { %p2186_p1 = scmp.lt.u32.totalorder %s2184_s25, %s2180_s4  ;;  %p2188_p3 = scmp.lt.u32.totalorder %s2180_s4, %s2708_s2 }
 0xa31   : > { %p2182_p12 = pnand %p2181_p9, %p2411_p10 }
 0xa32   : > { %p2187_p2 = por %p2186_p1, %p2185_p0 }
 0xa33   : > { %p2183_p13 = pneg %p2182_p12 }
 0xa34   : > { %p2189_p4 = por %p2188_p3, %p2187_p2 }
 0xa36   : > { %p2190_p5 = pnand %p2189_p4, %p2183_p13 }
 0xa38   : > { %2193 = shalt.err (!%p2190_p5)
}
 0xa39   : > { %2061 = dma.vmem_to_hbm [thread:$0]  (%p2411_p10), %s2710_s28, 16, %s2708_s2, %s1756_s6  }
 0xa3a PF: > { %s2827_s19 = sld [smem:[#allocation10_spill]]  ;;  %s2828_s30 = sld [smem:[#allocation8_spill]] }
 0xa40   : > { %p2067_p6 = scmp.ge.s32.totalorder %s2827_s19, 2  ;;  %s1789_s1 = sand.u32 1, %s2828_s30  }
 0xa41   : > { %s1790_s3 = scalar_lea.sflag [#allocation5], %s1789_s1 }
 0xa42   : > { %p2064_p7 = pnand %p2067_p6, %p2415_p11 }
 0xa44   : > { %2213 = dma.done.wait (!%p2064_p7), %s1790_s3, 16  }
 0xa45   : > { %2215 = vsyncadd (!%p2064_p7), %s1790_s3, 4294967280  ;;  %s2830_s8 = sld [smem:[#allocation11_spill]]  ;;  %s2831_s4 = sld [smem:[#allocation9_spill]] }
 0xa46   : > { %s2832_s1 = sld [smem:[#allocation12_spill]]  ;;  %s2833_s3 = smov %s2222_s26 }
 0xa4b   : > { %p42_p8 = scmp.ge.s32.totalorder %s2830_s8, 4   ;;  %s2834_s26 = smov %s2831_s4 }
 0xa4d   :  { %44 = sbr.rel (!%p42_p8) target bundleno = 30 (0x1e), region = 159 }
 0xa54   :  { %1794 = vsyncpa [#allocation5], 1 }
 0xa55   :  { %1796 = vsyncpa [#allocation5 + $0x1], 1 }

</bundles_post_ra>
